<compile_context>
chip_gen: v7x
topology: tpu7x:2x2x1
jax: 0.10.0
libtpu: 0.0.40
codegen_flags: <defaults>
</compile_context>

<pallas_src>
import jax
import jax.numpy as jnp
from jax.experimental import pallas as pl
from jax.experimental.pallas import tpu as pltpu

V_THRESHOLD = 1.0   # MultiStepIFNode defaults: v_threshold=1.0, v_reset=0.0 (hard reset)
LANE = 128          # TPU lane width
SUBLANE = 8         # TPU sublane width


def _round_up(x, m):
    return ((x + m - 1) // m) * m


# --------------------------- fused Pallas kernel ------------------------------

def _make_fused_bottleneck_kernel(connect_f, TB, H, W, Cin_p, width, Wd_p, Cout_p, K_p):
    if connect_f not in ('ADD', 'AND', 'IAND'):
        raise NotImplementedError(connect_f)
    N = TB * H * W

    def kernel(x_ref, w1_ref, s1_ref, b1_ref,
               w2_ref, s2_ref, b2_ref,
               w3_ref, s3_ref, b3_ref,
               o_ref, v1_ref, v2_ref, v3_ref, pad_ref, taps_ref):
        # Grid = (batch_tiles, T); axis 1 (T) is innermost & sequential.  Reset the three
        # membrane potentials, the zero halo and the taps slab padding at t == 0.
        @pl.when(pl.program_id(1) == 0)
        def _():
            v1_ref[...] = jnp.zeros_like(v1_ref)
            v2_ref[...] = jnp.zeros_like(v2_ref)
            v3_ref[...] = jnp.zeros_like(v3_ref)
            pad_ref[...] = jnp.zeros_like(pad_ref)    # halo rows/cols stay 0 for all t
            taps_ref[...] = jnp.zeros_like(taps_ref)  # K padding cols stay 0 for all t

        x = x_ref[0]                                  # (TB, H, W, Cin_p), f32 (identity path)
        xm = x.reshape(N, Cin_p)

        # ---- conv1 (1x1, bf16 MXU) + folded BN1 + IF1 (f32 state) -----------------------
        y1 = jnp.dot(xm.astype(jnp.bfloat16), w1_ref[...],
                     preferred_element_type=jnp.float32)
        y1 = y1 * s1_ref[...] + b1_ref[...]
        v1 = v1_ref[...] + y1
        fire1 = v1 >= V_THRESHOLD
        spike1 = jnp.where(fire1, 1.0, 0.0)
        v1_ref[...] = jnp.where(fire1, 0.0, v1)       # hard reset to 0

        # Stage the true-width spikes into the bf16 zero-padded halo buffer (spikes exact).
        pad_ref[:, 1:H + 1, 1:W + 1, :] = (
            spike1[:, :width].reshape(TB, H, W, width).astype(jnp.bfloat16))

        # ---- conv2 (3x3, stride=1, pad=1) as ONE matmul with K = 9*width (padded to K_p) ----
        # Gather the 9 statically shifted taps (true `width` channels each) into a bf16
        # (N, K_p) slab; trailing K_p - 9*width columns stay zero (matching zero w2 rows).
        for dy in range(3):
            for dx in range(3):
                k = dy * 3 + dx
                taps_ref[:, k * width:(k + 1) * width] = (
                    pad_ref[:, dy:dy + H, dx:dx + W, :].reshape(N, width))
        y2 = jnp.dot(taps_ref[...], w2_ref[...], preferred_element_type=jnp.float32)
        y2 = y2 * s2_ref[...] + b2_ref[...]
        v2 = v2_ref[...] + y2
        fire2 = v2 >= V_THRESHOLD
        spike2 = jnp.where(fire2, 1.0, 0.0)
        v2_ref[...] = jnp.where(fire2, 0.0, v2)

        # ---- conv3 (1x1, bf16 MXU) + BN3 + IF3 + SEW connect -----------------------------
        y3 = jnp.dot(spike2.astype(jnp.bfloat16), w3_ref[...],
                     preferred_element_type=jnp.float32)
        y3 = y3 * s3_ref[...] + b3_ref[...]
        v3 = v3_ref[...] + y3
        fire3 = v3 >= V_THRESHOLD
        spike3 = jnp.where(fire3, 1.0, 0.0)
        v3_ref[...] = jnp.where(fire3, 0.0, v3)

        ident = xm                                    # downsample is None -> identity == input
        if connect_f == 'ADD':
            out = spike3 + ident
        elif connect_f == 'AND':
            out = spike3 * ident
        else:  # 'IAND'
            out = ident * (1.0 - spike3)
        o_ref[0] = out.reshape(TB, H, W, Cout_p)      # lane-dense (Cout_p % 128 == 0) store

    return kernel


# ------------------------------ wrapper ---------------------------------------

def _fold_bn(gamma, beta, mean, var, c_pad, eps):
    s = gamma / jnp.sqrt(var + eps)
    b = beta - mean * s
    s = jnp.pad(s, (0, c_pad - s.shape[0])).astype(jnp.float32)
    b = jnp.pad(b, (0, c_pad - b.shape[0])).astype(jnp.float32)
    return s[None, :], b[None, :]                     # (1, Cp) for in-kernel broadcast


def _vmem_budget_bytes():
    """Per-generation scoped-VMEM budget: v7x has 64 MiB physical per TC (leave headroom);
    v5e/v6e have 128 MiB so we can afford larger activation tiles."""
    kind = jax.devices()[0].device_kind.lower()
    if '7' in kind:
        return 48 * 1024 * 1024
    return 100 * 1024 * 1024


def _footprint_bytes(TB, H, W, Cin_p, width, Wd_p, Cout_p, K_p):
    N = TB * H * W
    Hp2, Wp2 = H + 2, _round_up(W + 2, SUBLANE)
    halo_c = _round_up(width, LANE)                   # VMEM lane padding for the halo
    fp = 0
    fp += 2 * N * Cin_p * 4                           # input block  (double-buffered, f32)
    fp += 2 * N * Cout_p * 4                          # output block (double-buffered, f32)
    fp += N * (2 * Wd_p + Cout_p) * 4                 # membranes v1, v2, v3 (f32)
    fp += TB * Hp2 * Wp2 * halo_c * 2                 # bf16 halo
    fp += N * K_p * 2                                 # bf16 taps slab
    fp += 2 * (Cin_p * Wd_p + K_p * Wd_p + Wd_p * Cout_p) * 2   # bf16 weights, 2 buffers each
    return fp


def _pick_batch_tile(B, H, W, Cin_p, width, Wd_p, Cout_p, K_p, budget):
    divs = [d for d in range(1, B + 1) if B % d == 0]
    fits = [d for d in divs
            if int(1.25 * _footprint_bytes(d, H, W, Cin_p, width, Wd_p, Cout_p, K_p)) <= budget]
    if not fits:
        return 1
    # Prefer >= 2 batch tiles on the "parallel" grid axis (keeps both v7x TensorCores busy;
    # harmless on single-TC v5e/v6e); otherwise take the largest fitting tile.
    multi = [d for d in fits if B // d >= 2]
    return max(multi) if multi else max(fits)


def bottleneck_forward(x_nchw, params, connect_f='ADD', stride=1, dilation=1,
                       batch_tile=None, bn_eps=1e-5):
    """x_nchw: [T, B, C, H, W] -> [T, B, planes*4, H, W] (stride=1, downsample=None)."""
    if stride != 1 or dilation != 1:
        raise NotImplementedError("fused kernel supports stride=1, dilation=1 only")

    T, B, Cin, H, W = x_nchw.shape
    w1, w2, w3 = params['w1'], params['w2'], params['w3']
    width = w1.shape[1]
    Cout = w3.shape[1]
    assert Cin == Cout, "downsample is None -> inplanes must equal planes*expansion"

    Cin_p = _round_up(Cin, LANE)
    Wd_p = _round_up(width, LANE)
    Cout_p = _round_up(Cout, LANE)
    K_p = _round_up(9 * width, LANE)                  # packed conv2 contraction length
    assert Cin_p == Cout_p

    budget = _vmem_budget_bytes()
    TB = (_pick_batch_tile(B, H, W, Cin_p, width, Wd_p, Cout_p, K_p, budget)
          if batch_tile is None else batch_tile)
    assert B % TB == 0

    # Channels-last, zero-pad channels to lane-dense multiples of 128.
    x = jnp.transpose(x_nchw, (0, 1, 3, 4, 2)).astype(jnp.float32)
    x = jnp.pad(x, ((0, 0), (0, 0), (0, 0), (0, 0), (0, Cin_p - Cin)))

    # Weights (all bf16 for the MXU): 1x1 convs as [Cin, Cout]; the 3x3 conv packed into one
    # [K_p, Wd_p] slab whose rows are (ky, kx)-major over true-width input channels, matching
    # the in-kernel tap gather; padded rows/cols are zero.
    w1_p = jnp.pad(w1, ((0, Cin_p - Cin), (0, Wd_p - width))).astype(jnp.bfloat16)
    w2_flat = w2.reshape(9 * width, width).astype(jnp.bfloat16)
    w2_cat = jnp.zeros((K_p, Wd_p), jnp.bfloat16).at[:9 * width, :width].set(w2_flat)
    w3_p = jnp.pad(w3, ((0, Wd_p - width), (0, Cout_p - Cout))).astype(jnp.bfloat16)

    s1, b1 = _fold_bn(*params['bn1'], Wd_p, bn_eps)
    s2, b2 = _fold_bn(*params['bn2'], Wd_p, bn_eps)
    s3, b3 = _fold_bn(*params['bn3'], Cout_p, bn_eps)

    Wp2 = _round_up(W + 2, SUBLANE)                   # sublane-aligned halo row stride
    N = TB * H * W
    kernel = _make_fused_bottleneck_kernel(connect_f, TB, H, W, Cin_p, width, Wd_p, Cout_p, K_p)
    const = lambda b, t: (0, 0)                       # weights/BN constant across the grid

    out_p = pl.pallas_call(
        kernel,
        out_shape=jax.ShapeDtypeStruct((T, B, H, W, Cout_p), jnp.float32),
        grid=(B // TB, T),
        in_specs=[
            pl.BlockSpec((1, TB, H, W, Cin_p), lambda b, t: (t, b, 0, 0, 0)),  # x (also identity)
            pl.BlockSpec((Cin_p, Wd_p), const),                                # w1 (bf16)
            pl.BlockSpec((1, Wd_p), const),                                    # bn1 scale
            pl.BlockSpec((1, Wd_p), const),                                    # bn1 bias
            pl.BlockSpec((K_p, Wd_p), const),                                  # w2 packed (bf16)
            pl.BlockSpec((1, Wd_p), const),                                    # bn2 scale
            pl.BlockSpec((1, Wd_p), const),                                    # bn2 bias
            pl.BlockSpec((Wd_p, Cout_p), const),                               # w3 (bf16)
            pl.BlockSpec((1, Cout_p), const),                                  # bn3 scale
            pl.BlockSpec((1, Cout_p), const),                                  # bn3 bias
        ],
        out_specs=pl.BlockSpec((1, TB, H, W, Cout_p), lambda b, t: (t, b, 0, 0, 0)),
        scratch_shapes=[
            pltpu.VMEM((N, Wd_p), jnp.float32),                 # membrane v1
            pltpu.VMEM((N, Wd_p), jnp.float32),                 # membrane v2
            pltpu.VMEM((N, Cout_p), jnp.float32),               # membrane v3
            pltpu.VMEM((TB, H + 2, Wp2, width), jnp.bfloat16),  # zero-padded spike1 halo (bf16)
            pltpu.VMEM((N, K_p), jnp.bfloat16),                 # packed im2col taps slab (bf16)
        ],
        compiler_params=pltpu.CompilerParams(
            # batch tiles are independent (megacore on v7x); T carries the IF recurrence.
            dimension_semantics=("parallel", "arbitrary"),
            vmem_limit_bytes=budget,
        ),
    )(x, w1_p, s1, b1, w2_cat, s2, b2, w3_p, s3, b3)

    out = out_p[..., :Cout]                            # drop lane padding
    return jnp.transpose(out, (0, 1, 4, 2, 3))         # back to [T, B, C, H, W]


# ------------------------------ main -------------------------------------------

if __name__ == "__main__":
    T, B, H, W = 4, 2, 8, 8
    planes = 8
    groups, base_width, dilation, stride = 1, 64, 1, 1
    width = int(planes * (base_width / 64.0)) * groups            # = 8
    expansion = 4
    inplanes = planes * expansion                                 # = 32 (no downsample)

    key = jax.random.PRNGKey(0)
    ks = jax.random.split(key, 16)

    # deterministic synthetic parameters (shapes match the PyTorch module)
    params = {
        'w1': 0.3 * jax.random.normal(ks[1], (inplanes, width), jnp.float32),
        'bn1': (1.0 + 0.1 * jax.random.normal(ks[2], (width,), jnp.float32),   # gamma
                0.1 * jax.random.normal(ks[3], (width,), jnp.float32),         # beta
                0.05 * jax.random.normal(ks[4], (width,), jnp.float32),        # running_mean
                1.0 + 0.1 * jax.random.uniform(ks[5], (width,), jnp.float32)), # running_var
        'w2': 0.2 * jax.random.normal(ks[6], (9, width, width), jnp.float32),  # [ky*kx, Cin, Cout]
        'bn2': (1.0 + 0.1 * jax.random.normal(ks[7], (width,), jnp.float32),
                0.1 * jax.random.normal(ks[8], (width,), jnp.float32),
                0.05 * jax.random.normal(ks[9], (width,), jnp.float32),
                1.0 + 0.1 * jax.random.uniform(ks[10], (width,), jnp.float32)),
        'w3': 0.3 * jax.random.normal(ks[11], (width, planes * expansion), jnp.float32),
        'bn3': (1.0 + 0.1 * jax.random.normal(ks[12], (planes * expansion,), jnp.float32),
                0.1 * jax.random.normal(ks[13], (planes * expansion,), jnp.float32),
                0.05 * jax.random.normal(ks[14], (planes * expansion,), jnp.float32),
                1.0 + 0.1 * jax.random.uniform(ks[15], (planes * expansion,), jnp.float32)),
    }

    x = jax.random.uniform(ks[0], (T, B, inplanes, H, W), jnp.float32)

    fwd = jax.jit(bottleneck_forward,
                  static_argnames=('connect_f', 'stride', 'dilation', 'batch_tile', 'bn_eps'))
    out = fwd(x, params, connect_f='ADD', stride=stride, dilation=dilation)
    out = jax.block_until_ready(out)

    assert out.shape == (T, B, planes * expansion, H, W), out.shape
    assert out.dtype == jnp.float32
    assert bool(jnp.all(jnp.isfinite(out)))
    # SEW 'ADD' connect: output = spike{0,1} + identity(uniform in [0,1)) -> bounded in [0, 2)
    assert bool(jnp.all((out >= 0.0) & (out < 2.0)))
    print("KERNEL_OK")
</pallas_src>

<mosaic_0001>
module attributes {stable_mosaic.version = 11 : i64} {
  func.func @kernel(%arg0: i32, %arg1: i32, %arg2: memref<1x1x8x8x128xf32, #tpu.memory_space<vmem>>, %arg3: memref<128x128xbf16, #tpu.memory_space<vmem>>, %arg4: memref<1x128xf32, #tpu.memory_space<vmem>>, %arg5: memref<1x128xf32, #tpu.memory_space<vmem>>, %arg6: memref<128x128xbf16, #tpu.memory_space<vmem>>, %arg7: memref<1x128xf32, #tpu.memory_space<vmem>>, %arg8: memref<1x128xf32, #tpu.memory_space<vmem>>, %arg9: memref<128x128xbf16, #tpu.memory_space<vmem>>, %arg10: memref<1x128xf32, #tpu.memory_space<vmem>>, %arg11: memref<1x128xf32, #tpu.memory_space<vmem>>, %arg12: memref<1x1x8x8x128xf32, #tpu.memory_space<vmem>>, %arg13: memref<64x128xf32, #tpu.memory_space<vmem>>, %arg14: memref<64x128xf32, #tpu.memory_space<vmem>>, %arg15: memref<64x128xf32, #tpu.memory_space<vmem>>, %arg16: memref<1x10x16x8xbf16, #tpu.memory_space<vmem>>, %arg17: memref<64x128xbf16, #tpu.memory_space<vmem>>) attributes {dimension_semantics = [#tpu.dimension_semantics<parallel>, #tpu.dimension_semantics<arbitrary>], iteration_bounds = array<i64: 2, 4>, scalar_prefetch = 0 : i64, scratch_operands = 5 : i64, tpu.core_type = #tpu.core_type<tc>, window_params = [{transform_indices = @transform_0, window_bounds = array<i64: 1, 1, 8, 8, 128>}, {pipeline_mode = #tpu.pipeline_mode<synchronous>, transform_indices = @transform_1, window_bounds = array<i64: 128, 128>}, {pipeline_mode = #tpu.pipeline_mode<synchronous>, transform_indices = @transform_2, window_bounds = array<i64: 1, 128>}, {pipeline_mode = #tpu.pipeline_mode<synchronous>, transform_indices = @transform_3, window_bounds = array<i64: 1, 128>}, {pipeline_mode = #tpu.pipeline_mode<synchronous>, transform_indices = @transform_4, window_bounds = array<i64: 128, 128>}, {pipeline_mode = #tpu.pipeline_mode<synchronous>, transform_indices = @transform_5, window_bounds = array<i64: 1, 128>}, {pipeline_mode = #tpu.pipeline_mode<synchronous>, transform_indices = @transform_6, window_bounds = array<i64: 1, 128>}, {pipeline_mode = #tpu.pipeline_mode<synchronous>, transform_indices = @transform_7, window_bounds = array<i64: 128, 128>}, {pipeline_mode = #tpu.pipeline_mode<synchronous>, transform_indices = @transform_8, window_bounds = array<i64: 1, 128>}, {pipeline_mode = #tpu.pipeline_mode<synchronous>, transform_indices = @transform_9, window_bounds = array<i64: 1, 128>}, {transform_indices = @transform_10, window_bounds = array<i64: 1, 1, 8, 8, 128>}]} {
    %c0_i32 = arith.constant 0 : i32
    %0 = arith.cmpi eq, %arg1, %c0_i32 : i32
    %1 = arith.extui %0 : i1 to i32
    %c0_i32_0 = arith.constant 0 : i32
    %2 = arith.cmpi ne, %1, %c0_i32_0 : i32
    scf.if %2 {
      %cst_104 = arith.constant 0.000000e+00 : f32
      %99 = vector.broadcast %cst_104 : f32 to vector<64x128xf32>
      %c0_105 = arith.constant 0 : index
      %c0_106 = arith.constant 0 : index
      %100 = vector.load %arg13[%c0_105, %c0_106] : memref<64x128xf32, #tpu.memory_space<vmem>>, vector<64x128xf32>
      tpu.vector_store %arg13[%c0_105, %c0_106], %99 {strides = array<i32>} : memref<64x128xf32, #tpu.memory_space<vmem>>, vector<64x128xf32>,
      %cst_107 = arith.constant 0.000000e+00 : f32
      %101 = vector.broadcast %cst_107 : f32 to vector<64x128xf32>
      %c0_108 = arith.constant 0 : index
      %c0_109 = arith.constant 0 : index
      %102 = vector.load %arg14[%c0_108, %c0_109] : memref<64x128xf32, #tpu.memory_space<vmem>>, vector<64x128xf32>
      tpu.vector_store %arg14[%c0_108, %c0_109], %101 {strides = array<i32>} : memref<64x128xf32, #tpu.memory_space<vmem>>, vector<64x128xf32>,
      %cst_110 = arith.constant 0.000000e+00 : f32
      %103 = vector.broadcast %cst_110 : f32 to vector<64x128xf32>
      %c0_111 = arith.constant 0 : index
      %c0_112 = arith.constant 0 : index
      %104 = vector.load %arg15[%c0_111, %c0_112] : memref<64x128xf32, #tpu.memory_space<vmem>>, vector<64x128xf32>
      tpu.vector_store %arg15[%c0_111, %c0_112], %103 {strides = array<i32>} : memref<64x128xf32, #tpu.memory_space<vmem>>, vector<64x128xf32>,
      %cst_113 = arith.constant 0.000000e+00 : bf16
      %105 = vector.broadcast %cst_113 : bf16 to vector<1x10x16x8xbf16>
      %c0_114 = arith.constant 0 : index
      %c0_115 = arith.constant 0 : index
      %c0_116 = arith.constant 0 : index
      %c0_117 = arith.constant 0 : index
      %106 = vector.load %arg16[%c0_114, %c0_115, %c0_116, %c0_117] : memref<1x10x16x8xbf16, #tpu.memory_space<vmem>>, vector<1x10x16x8xbf16>
      tpu.vector_store %arg16[%c0_114, %c0_115, %c0_116, %c0_117], %105 {strides = array<i32>} : memref<1x10x16x8xbf16, #tpu.memory_space<vmem>>, vector<1x10x16x8xbf16>,
      %cst_118 = arith.constant 0.000000e+00 : bf16
      %107 = vector.broadcast %cst_118 : bf16 to vector<64x128xbf16>
      %c0_119 = arith.constant 0 : index
      %c0_120 = arith.constant 0 : index
      %108 = vector.load %arg17[%c0_119, %c0_120] : memref<64x128xbf16, #tpu.memory_space<vmem>>, vector<64x128xbf16>
      tpu.vector_store %arg17[%c0_119, %c0_120], %107 {strides = array<i32>} : memref<64x128xbf16, #tpu.memory_space<vmem>>, vector<64x128xbf16>,
    } else {
    }
    %c0 = arith.constant 0 : index
    %c0_1 = arith.constant 0 : index
    %c0_2 = arith.constant 0 : index
    %c0_3 = arith.constant 0 : index
    %c0_4 = arith.constant 0 : index
    %3 = vector.load %arg2[%c0, %c0_1, %c0_2, %c0_3, %c0_4] : memref<1x1x8x8x128xf32, #tpu.memory_space<vmem>>, vector<1x1x8x8x128xf32>
    %4 = vector.shape_cast %3 : vector<1x1x8x8x128xf32> to vector<1x8x8x128xf32>
    %5 = vector.shape_cast %4 : vector<1x8x8x128xf32> to vector<64x128xf32>
    %6 = arith.truncf %5 : vector<64x128xf32> to vector<64x128xbf16>
    %c0_5 = arith.constant 0 : index
    %c0_6 = arith.constant 0 : index
    %7 = vector.load %arg3[%c0_5, %c0_6] : memref<128x128xbf16, #tpu.memory_space<vmem>>, vector<128x128xbf16>
    %cst = arith.constant dense<0.000000e+00> : vector<64x128xf32>
    %8 = tpu.matmul %6, %7, %cst {dimension_numbers = #tpu.dot_dimension_numbers<[1], [0], [0], [1], [0, 0, 1, 1], [], []>} : vector<64x128xbf16>, vector<128x128xbf16>, vector<64x128xf32> -> vector<64x128xf32>
    %c0_7 = arith.constant 0 : index
    %c0_8 = arith.constant 0 : index
    %9 = vector.load %arg4[%c0_7, %c0_8] : memref<1x128xf32, #tpu.memory_space<vmem>>, vector<1x128xf32>
    %10 = vector.broadcast %9 : vector<1x128xf32> to vector<64x128xf32>
    %11 = arith.mulf %8, %10 : vector<64x128xf32>
    %c0_9 = arith.constant 0 : index
    %c0_10 = arith.constant 0 : index
    %12 = vector.load %arg5[%c0_9, %c0_10] : memref<1x128xf32, #tpu.memory_space<vmem>>, vector<1x128xf32>
    %13 = vector.broadcast %12 : vector<1x128xf32> to vector<64x128xf32>
    %14 = arith.addf %11, %13 : vector<64x128xf32>
    %c0_11 = arith.constant 0 : index
    %c0_12 = arith.constant 0 : index
    %15 = vector.load %arg13[%c0_11, %c0_12] : memref<64x128xf32, #tpu.memory_space<vmem>>, vector<64x128xf32>
    %16 = arith.addf %15, %14 : vector<64x128xf32>
    %cst_13 = arith.constant 1.000000e+00 : f32
    %17 = vector.broadcast %cst_13 : f32 to vector<64x128xf32>
    %18 = arith.cmpf oge, %16, %17 : vector<64x128xf32>
    %cst_14 = arith.constant 1.000000e+00 : f32
    %cst_15 = arith.constant 0.000000e+00 : f32
    %19 = vector.broadcast %cst_14 : f32 to vector<64x128xf32>
    %20 = vector.broadcast %cst_15 : f32 to vector<64x128xf32>
    %21 = arith.select %18, %19, %20 : vector<64x128xi1>, vector<64x128xf32>
    %cst_16 = arith.constant 0.000000e+00 : f32
    %22 = vector.broadcast %cst_16 : f32 to vector<64x128xf32>
    %23 = arith.select %18, %22, %16 : vector<64x128xi1>, vector<64x128xf32>
    %c0_17 = arith.constant 0 : index
    %c0_18 = arith.constant 0 : index
    %24 = vector.load %arg13[%c0_17, %c0_18] : memref<64x128xf32, #tpu.memory_space<vmem>>, vector<64x128xf32>
    tpu.vector_store %arg13[%c0_17, %c0_18], %23 {strides = array<i32>} : memref<64x128xf32, #tpu.memory_space<vmem>>, vector<64x128xf32>,
    %25 = vector.extract_strided_slice %21 {offsets = [0, 0], sizes = [64, 8], strides = [1, 1]} : vector<64x128xf32> to vector<64x8xf32>
    %26 = vector.shape_cast %25 : vector<64x8xf32> to vector<1x8x8x8xf32>
    %27 = arith.truncf %26 : vector<1x8x8x8xf32> to vector<1x8x8x8xbf16>
    %c0_19 = arith.constant 0 : index
    %c1 = arith.constant 1 : index
    %c1_20 = arith.constant 1 : index
    %c0_21 = arith.constant 0 : index
    %28 = vector.load %arg16[%c0_19, %c1, %c1_20, %c0_21] : memref<1x10x16x8xbf16, #tpu.memory_space<vmem>>, vector<1x8x8x8xbf16>
    tpu.vector_store %arg16[%c0_19, %c1, %c1_20, %c0_21], %27 {strides = array<i32>} : memref<1x10x16x8xbf16, #tpu.memory_space<vmem>>, vector<1x8x8x8xbf16>,
    %c0_22 = arith.constant 0 : index
    %c0_23 = arith.constant 0 : index
    %c0_24 = arith.constant 0 : index
    %c0_25 = arith.constant 0 : index
    %29 = vector.load %arg16[%c0_22, %c0_23, %c0_24, %c0_25] : memref<1x10x16x8xbf16, #tpu.memory_space<vmem>>, vector<1x8x8x8xbf16>
    %30 = vector.shape_cast %29 : vector<1x8x8x8xbf16> to vector<64x8xbf16>
    %c0_26 = arith.constant 0 : index
    %c0_27 = arith.constant 0 : index
    %31 = vector.load %arg17[%c0_26, %c0_27] : memref<64x128xbf16, #tpu.memory_space<vmem>>, vector<64x8xbf16>
    tpu.vector_store %arg17[%c0_26, %c0_27], %30 {strides = array<i32>} : memref<64x128xbf16, #tpu.memory_space<vmem>>, vector<64x8xbf16>,
    %c0_28 = arith.constant 0 : index
    %c0_29 = arith.constant 0 : index
    %c1_30 = arith.constant 1 : index
    %c0_31 = arith.constant 0 : index
    %32 = vector.load %arg16[%c0_28, %c0_29, %c1_30, %c0_31] : memref<1x10x16x8xbf16, #tpu.memory_space<vmem>>, vector<1x8x8x8xbf16>
    %33 = vector.shape_cast %32 : vector<1x8x8x8xbf16> to vector<64x8xbf16>
    %c0_32 = arith.constant 0 : index
    %c8 = arith.constant 8 : index
    %34 = vector.load %arg17[%c0_32, %c8] : memref<64x128xbf16, #tpu.memory_space<vmem>>, vector<64x8xbf16>
    tpu.vector_store %arg17[%c0_32, %c8], %33 {strides = array<i32>} : memref<64x128xbf16, #tpu.memory_space<vmem>>, vector<64x8xbf16>,
    %c0_33 = arith.constant 0 : index
    %c0_34 = arith.constant 0 : index
    %c2 = arith.constant 2 : index
    %c0_35 = arith.constant 0 : index
    %35 = vector.load %arg16[%c0_33, %c0_34, %c2, %c0_35] : memref<1x10x16x8xbf16, #tpu.memory_space<vmem>>, vector<1x8x8x8xbf16>
    %36 = vector.shape_cast %35 : vector<1x8x8x8xbf16> to vector<64x8xbf16>
    %c0_36 = arith.constant 0 : index
    %c16 = arith.constant 16 : index
    %37 = vector.load %arg17[%c0_36, %c16] : memref<64x128xbf16, #tpu.memory_space<vmem>>, vector<64x8xbf16>
    tpu.vector_store %arg17[%c0_36, %c16], %36 {strides = array<i32>} : memref<64x128xbf16, #tpu.memory_space<vmem>>, vector<64x8xbf16>,
    %c0_37 = arith.constant 0 : index
    %c1_38 = arith.constant 1 : index
    %c0_39 = arith.constant 0 : index
    %c0_40 = arith.constant 0 : index
    %38 = vector.load %arg16[%c0_37, %c1_38, %c0_39, %c0_40] : memref<1x10x16x8xbf16, #tpu.memory_space<vmem>>, vector<1x8x8x8xbf16>
    %39 = vector.shape_cast %38 : vector<1x8x8x8xbf16> to vector<64x8xbf16>
    %c0_41 = arith.constant 0 : index
    %c24 = arith.constant 24 : index
    %40 = vector.load %arg17[%c0_41, %c24] : memref<64x128xbf16, #tpu.memory_space<vmem>>, vector<64x8xbf16>
    tpu.vector_store %arg17[%c0_41, %c24], %39 {strides = array<i32>} : memref<64x128xbf16, #tpu.memory_space<vmem>>, vector<64x8xbf16>,
    %c0_42 = arith.constant 0 : index
    %c1_43 = arith.constant 1 : index
    %c1_44 = arith.constant 1 : index
    %c0_45 = arith.constant 0 : index
    %41 = vector.load %arg16[%c0_42, %c1_43, %c1_44, %c0_45] : memref<1x10x16x8xbf16, #tpu.memory_space<vmem>>, vector<1x8x8x8xbf16>
    %42 = vector.shape_cast %41 : vector<1x8x8x8xbf16> to vector<64x8xbf16>
    %c0_46 = arith.constant 0 : index
    %c32 = arith.constant 32 : index
    %43 = vector.load %arg17[%c0_46, %c32] : memref<64x128xbf16, #tpu.memory_space<vmem>>, vector<64x8xbf16>
    tpu.vector_store %arg17[%c0_46, %c32], %42 {strides = array<i32>} : memref<64x128xbf16, #tpu.memory_space<vmem>>, vector<64x8xbf16>,
    %c0_47 = arith.constant 0 : index
    %c1_48 = arith.constant 1 : index
    %c2_49 = arith.constant 2 : index
    %c0_50 = arith.constant 0 : index
    %44 = vector.load %arg16[%c0_47, %c1_48, %c2_49, %c0_50] : memref<1x10x16x8xbf16, #tpu.memory_space<vmem>>, vector<1x8x8x8xbf16>
    %45 = vector.shape_cast %44 : vector<1x8x8x8xbf16> to vector<64x8xbf16>
    %c0_51 = arith.constant 0 : index
    %c40 = arith.constant 40 : index
    %46 = vector.load %arg17[%c0_51, %c40] : memref<64x128xbf16, #tpu.memory_space<vmem>>, vector<64x8xbf16>
    tpu.vector_store %arg17[%c0_51, %c40], %45 {strides = array<i32>} : memref<64x128xbf16, #tpu.memory_space<vmem>>, vector<64x8xbf16>,
    %c0_52 = arith.constant 0 : index
    %c2_53 = arith.constant 2 : index
    %c0_54 = arith.constant 0 : index
    %c0_55 = arith.constant 0 : index
    %47 = vector.load %arg16[%c0_52, %c2_53, %c0_54, %c0_55] : memref<1x10x16x8xbf16, #tpu.memory_space<vmem>>, vector<1x8x8x8xbf16>
    %48 = vector.shape_cast %47 : vector<1x8x8x8xbf16> to vector<64x8xbf16>
    %c0_56 = arith.constant 0 : index
    %c48 = arith.constant 48 : index
    %49 = vector.load %arg17[%c0_56, %c48] : memref<64x128xbf16, #tpu.memory_space<vmem>>, vector<64x8xbf16>
    tpu.vector_store %arg17[%c0_56, %c48], %48 {strides = array<i32>} : memref<64x128xbf16, #tpu.memory_space<vmem>>, vector<64x8xbf16>,
    %c0_57 = arith.constant 0 : index
    %c2_58 = arith.constant 2 : index
    %c1_59 = arith.constant 1 : index
    %c0_60 = arith.constant 0 : index
    %50 = vector.load %arg16[%c0_57, %c2_58, %c1_59, %c0_60] : memref<1x10x16x8xbf16, #tpu.memory_space<vmem>>, vector<1x8x8x8xbf16>
    %51 = vector.shape_cast %50 : vector<1x8x8x8xbf16> to vector<64x8xbf16>
    %c0_61 = arith.constant 0 : index
    %c56 = arith.constant 56 : index
    %52 = vector.load %arg17[%c0_61, %c56] : memref<64x128xbf16, #tpu.memory_space<vmem>>, vector<64x8xbf16>
    tpu.vector_store %arg17[%c0_61, %c56], %51 {strides = array<i32>} : memref<64x128xbf16, #tpu.memory_space<vmem>>, vector<64x8xbf16>,
    %c0_62 = arith.constant 0 : index
    %c2_63 = arith.constant 2 : index
    %c2_64 = arith.constant 2 : index
    %c0_65 = arith.constant 0 : index
    %53 = vector.load %arg16[%c0_62, %c2_63, %c2_64, %c0_65] : memref<1x10x16x8xbf16, #tpu.memory_space<vmem>>, vector<1x8x8x8xbf16>
    %54 = vector.shape_cast %53 : vector<1x8x8x8xbf16> to vector<64x8xbf16>
    %c0_66 = arith.constant 0 : index
    %c64 = arith.constant 64 : index
    %55 = vector.load %arg17[%c0_66, %c64] : memref<64x128xbf16, #tpu.memory_space<vmem>>, vector<64x8xbf16>
    tpu.vector_store %arg17[%c0_66, %c64], %54 {strides = array<i32>} : memref<64x128xbf16, #tpu.memory_space<vmem>>, vector<64x8xbf16>,
    %c0_67 = arith.constant 0 : index
    %c0_68 = arith.constant 0 : index
    %56 = vector.load %arg17[%c0_67, %c0_68] : memref<64x128xbf16, #tpu.memory_space<vmem>>, vector<64x128xbf16>
    %c0_69 = arith.constant 0 : index
    %c0_70 = arith.constant 0 : index
    %57 = vector.load %arg6[%c0_69, %c0_70] : memref<128x128xbf16, #tpu.memory_space<vmem>>, vector<128x128xbf16>
    %cst_71 = arith.constant dense<0.000000e+00> : vector<64x128xf32>
    %58 = tpu.matmul %56, %57, %cst_71 {dimension_numbers = #tpu.dot_dimension_numbers<[1], [0], [0], [1], [0, 0, 1, 1], [], []>} : vector<64x128xbf16>, vector<128x128xbf16>, vector<64x128xf32> -> vector<64x128xf32>
    %c0_72 = arith.constant 0 : index
    %c0_73 = arith.constant 0 : index
    %59 = vector.load %arg7[%c0_72, %c0_73] : memref<1x128xf32, #tpu.memory_space<vmem>>, vector<1x128xf32>
    %60 = vector.broadcast %59 : vector<1x128xf32> to vector<64x128xf32>
    %61 = arith.mulf %58, %60 : vector<64x128xf32>
    %c0_74 = arith.constant 0 : index
    %c0_75 = arith.constant 0 : index
    %62 = vector.load %arg8[%c0_74, %c0_75] : memref<1x128xf32, #tpu.memory_space<vmem>>, vector<1x128xf32>
    %63 = vector.broadcast %62 : vector<1x128xf32> to vector<64x128xf32>
    %64 = arith.addf %61, %63 : vector<64x128xf32>
    %c0_76 = arith.constant 0 : index
    %c0_77 = arith.constant 0 : index
    %65 = vector.load %arg14[%c0_76, %c0_77] : memref<64x128xf32, #tpu.memory_space<vmem>>, vector<64x128xf32>
    %66 = arith.addf %65, %64 : vector<64x128xf32>
    %cst_78 = arith.constant 1.000000e+00 : f32
    %67 = vector.broadcast %cst_78 : f32 to vector<64x128xf32>
    %68 = arith.cmpf oge, %66, %67 : vector<64x128xf32>
    %cst_79 = arith.constant 1.000000e+00 : f32
    %cst_80 = arith.constant 0.000000e+00 : f32
    %69 = vector.broadcast %cst_79 : f32 to vector<64x128xf32>
    %70 = vector.broadcast %cst_80 : f32 to vector<64x128xf32>
    %71 = arith.select %68, %69, %70 : vector<64x128xi1>, vector<64x128xf32>
    %cst_81 = arith.constant 0.000000e+00 : f32
    %72 = vector.broadcast %cst_81 : f32 to vector<64x128xf32>
    %73 = arith.select %68, %72, %66 : vector<64x128xi1>, vector<64x128xf32>
    %c0_82 = arith.constant 0 : index
    %c0_83 = arith.constant 0 : index
    %74 = vector.load %arg14[%c0_82, %c0_83] : memref<64x128xf32, #tpu.memory_space<vmem>>, vector<64x128xf32>
    tpu.vector_store %arg14[%c0_82, %c0_83], %73 {strides = array<i32>} : memref<64x128xf32, #tpu.memory_space<vmem>>, vector<64x128xf32>,
    %75 = arith.truncf %71 : vector<64x128xf32> to vector<64x128xbf16>
    %c0_84 = arith.constant 0 : index
    %c0_85 = arith.constant 0 : index
    %76 = vector.load %arg9[%c0_84, %c0_85] : memref<128x128xbf16, #tpu.memory_space<vmem>>, vector<128x128xbf16>
    %cst_86 = arith.constant dense<0.000000e+00> : vector<64x128xf32>
    %77 = tpu.matmul %75, %76, %cst_86 {dimension_numbers = #tpu.dot_dimension_numbers<[1], [0], [0], [1], [0, 0, 1, 1], [], []>} : vector<64x128xbf16>, vector<128x128xbf16>, vector<64x128xf32> -> vector<64x128xf32>
    %c0_87 = arith.constant 0 : index
    %c0_88 = arith.constant 0 : index
    %78 = vector.load %arg10[%c0_87, %c0_88] : memref<1x128xf32, #tpu.memory_space<vmem>>, vector<1x128xf32>
    %79 = vector.broadcast %78 : vector<1x128xf32> to vector<64x128xf32>
    %80 = arith.mulf %77, %79 : vector<64x128xf32>
    %c0_89 = arith.constant 0 : index
    %c0_90 = arith.constant 0 : index
    %81 = vector.load %arg11[%c0_89, %c0_90] : memref<1x128xf32, #tpu.memory_space<vmem>>, vector<1x128xf32>
    %82 = vector.broadcast %81 : vector<1x128xf32> to vector<64x128xf32>
    %83 = arith.addf %80, %82 : vector<64x128xf32>
    %c0_91 = arith.constant 0 : index
    %c0_92 = arith.constant 0 : index
    %84 = vector.load %arg15[%c0_91, %c0_92] : memref<64x128xf32, #tpu.memory_space<vmem>>, vector<64x128xf32>
    %85 = arith.addf %84, %83 : vector<64x128xf32>
    %cst_93 = arith.constant 1.000000e+00 : f32
    %86 = vector.broadcast %cst_93 : f32 to vector<64x128xf32>
    %87 = arith.cmpf oge, %85, %86 : vector<64x128xf32>
    %cst_94 = arith.constant 1.000000e+00 : f32
    %cst_95 = arith.constant 0.000000e+00 : f32
    %88 = vector.broadcast %cst_94 : f32 to vector<64x128xf32>
    %89 = vector.broadcast %cst_95 : f32 to vector<64x128xf32>
    %90 = arith.select %87, %88, %89 : vector<64x128xi1>, vector<64x128xf32>
    %cst_96 = arith.constant 0.000000e+00 : f32
    %91 = vector.broadcast %cst_96 : f32 to vector<64x128xf32>
    %92 = arith.select %87, %91, %85 : vector<64x128xi1>, vector<64x128xf32>
    %c0_97 = arith.constant 0 : index
    %c0_98 = arith.constant 0 : index
    %93 = vector.load %arg15[%c0_97, %c0_98] : memref<64x128xf32, #tpu.memory_space<vmem>>, vector<64x128xf32>
    tpu.vector_store %arg15[%c0_97, %c0_98], %92 {strides = array<i32>} : memref<64x128xf32, #tpu.memory_space<vmem>>, vector<64x128xf32>,
    %94 = arith.addf %90, %5 : vector<64x128xf32>
    %95 = vector.shape_cast %94 : vector<64x128xf32> to vector<1x8x8x128xf32>
    %c0_99 = arith.constant 0 : index
    %c0_100 = arith.constant 0 : index
    %c0_101 = arith.constant 0 : index
    %c0_102 = arith.constant 0 : index
    %c0_103 = arith.constant 0 : index
    %96 = vector.load %arg12[%c0_99, %c0_100, %c0_101, %c0_102, %c0_103] : memref<1x1x8x8x128xf32, #tpu.memory_space<vmem>>, vector<1x1x8x8x128xf32>
    %97 = vector.shape_cast %96 : vector<1x1x8x8x128xf32> to vector<1x8x8x128xf32>
    %98 = vector.shape_cast %95 : vector<1x8x8x128xf32> to vector<1x1x8x8x128xf32>
    tpu.vector_store %arg12[%c0_99, %c0_100, %c0_101, %c0_102, %c0_103], %98 {strides = array<i32>} : memref<1x1x8x8x128xf32, #tpu.memory_space<vmem>>, vector<1x1x8x8x128xf32>,
    return
  }
  func.func @transform_0(%arg0: i32, %arg1: i32) -> (i32, i32, i32, i32, i32) {
    %c0_i32 = arith.constant 0 : i32
    %c0_i32_0 = arith.constant 0 : i32
    %c0_i32_1 = arith.constant 0 : i32
    %c0_i32_2 = arith.constant 0 : i32
    return %arg1, %arg0, %c0_i32, %c0_i32_0, %c0_i32_1 : i32, i32, i32, i32, i32
  }
  func.func @transform_1(%arg0: i32, %arg1: i32) -> (i32, i32) {
    %c0_i32 = arith.constant 0 : i32
    %c0_i32_0 = arith.constant 0 : i32
    %c0_i32_1 = arith.constant 0 : i32
    return %c0_i32, %c0_i32_0 : i32, i32
  }
  func.func @transform_2(%arg0: i32, %arg1: i32) -> (i32, i32) {
    %c0_i32 = arith.constant 0 : i32
    %c0_i32_0 = arith.constant 0 : i32
    %c0_i32_1 = arith.constant 0 : i32
    return %c0_i32, %c0_i32_0 : i32, i32
  }
  func.func @transform_3(%arg0: i32, %arg1: i32) -> (i32, i32) {
    %c0_i32 = arith.constant 0 : i32
    %c0_i32_0 = arith.constant 0 : i32
    %c0_i32_1 = arith.constant 0 : i32
    return %c0_i32, %c0_i32_0 : i32, i32
  }
  func.func @transform_4(%arg0: i32, %arg1: i32) -> (i32, i32) {
    %c0_i32 = arith.constant 0 : i32
    %c0_i32_0 = arith.constant 0 : i32
    %c0_i32_1 = arith.constant 0 : i32
    return %c0_i32, %c0_i32_0 : i32, i32
  }
  func.func @transform_5(%arg0: i32, %arg1: i32) -> (i32, i32) {
    %c0_i32 = arith.constant 0 : i32
    %c0_i32_0 = arith.constant 0 : i32
    %c0_i32_1 = arith.constant 0 : i32
    return %c0_i32, %c0_i32_0 : i32, i32
  }
  func.func @transform_6(%arg0: i32, %arg1: i32) -> (i32, i32) {
    %c0_i32 = arith.constant 0 : i32
    %c0_i32_0 = arith.constant 0 : i32
    %c0_i32_1 = arith.constant 0 : i32
    return %c0_i32, %c0_i32_0 : i32, i32
  }
  func.func @transform_7(%arg0: i32, %arg1: i32) -> (i32, i32) {
    %c0_i32 = arith.constant 0 : i32
    %c0_i32_0 = arith.constant 0 : i32
    %c0_i32_1 = arith.constant 0 : i32
    return %c0_i32, %c0_i32_0 : i32, i32
  }
  func.func @transform_8(%arg0: i32, %arg1: i32) -> (i32, i32) {
    %c0_i32 = arith.constant 0 : i32
    %c0_i32_0 = arith.constant 0 : i32
    %c0_i32_1 = arith.constant 0 : i32
    return %c0_i32, %c0_i32_0 : i32, i32
  }
  func.func @transform_9(%arg0: i32, %arg1: i32) -> (i32, i32) {
    %c0_i32 = arith.constant 0 : i32
    %c0_i32_0 = arith.constant 0 : i32
    %c0_i32_1 = arith.constant 0 : i32
    return %c0_i32, %c0_i32_0 : i32, i32
  }
  func.func @transform_10(%arg0: i32, %arg1: i32) -> (i32, i32, i32, i32, i32) {
    %c0_i32 = arith.constant 0 : i32
    %c0_i32_0 = arith.constant 0 : i32
    %c0_i32_1 = arith.constant 0 : i32
    %c0_i32_2 = arith.constant 0 : i32
    return %arg1, %arg0, %c0_i32, %c0_i32_0, %c0_i32_1 : i32, i32, i32, i32, i32
  }
}

</mosaic_0001>

<bundles_post_ra>
// kernel: bottleneck_forward.1
= control target key start
LH: loop header
LB: loop body
LE: loop exit
PB: predicated region body
PF: predicated region fallthrough
CT: control target
= control target key end

     0   :  { %s4514_s0 = inlined_call_operand.hbm [shape: f32[4,2,8,8,128], index: 0, kind: input, shape index: {}]   ;;  %s4515_s1 = inlined_call_operand.hbm [shape: bf16[128,128], index: 1, kind: input, shape index: {}]   ;;  %s4516_s2 = inlined_call_operand.hbm [shape: f32[1,128], index: 2, kind: input, shape index: {}]   ;;  %s4517_s3 = inlined_call_operand.hbm [shape: f32[1,128], index: 3, kind: input, shape index: {}]   ;;  %s4518_s4 = inlined_call_operand.hbm [shape: bf16[128,128], index: 4, kind: input, shape index: {}]   ;;  %s4519_s5 = inlined_call_operand.hbm [shape: f32[1,128], index: 5, kind: input, shape index: {}]   ;;  %s4520_s6 = inlined_call_operand.hbm [shape: f32[1,128], index: 6, kind: input, shape index: {}]   ;;  %s4521_s7 = inlined_call_operand.hbm [shape: bf16[128,128], index: 7, kind: input, shape index: {}]   ;;  %s4522_s8 = inlined_call_operand.hbm [shape: f32[1,128], index: 8, kind: input, shape index: {}]   ;;  %s4523_s9 = inlined_call_operand.hbm [shape: f32[1,128], index: 9, kind: input, shape index: {}]   ;;  %s4524_s10 = inlined_call_operand.hbm [shape: f32[4,2,8,8,128], index: 10, kind: output, shape index: {}]  }
   0x1   :  { %4539 = sst [smem:[#allocation36_spill]] %s4514_s0 }
   0x2   :  { %4540 = sst [smem:[#allocation37_spill]] %s4515_s1 }
   0x3   :  { %4541 = sst [smem:[#allocation38_spill]] %s4516_s2 }
   0x4   :  { %4542 = sst [smem:[#allocation39_spill]] %s4517_s3 }
   0x5   :  { %4543 = sst [smem:[#allocation40_spill]] %s4518_s4 }
   0x6   :  { %4544 = sst [smem:[#allocation41_spill]] %s4519_s5 }
   0x7   :  { %4545 = sst [smem:[#allocation42_spill]] %s4524_s10 }
   0x8   :  { %15 = vsyncpa [#allocation8], 0 }
   0x9   :  { %17 = vsyncpa [#allocation8 + $0x1], 0 }
   0xa   :  { %18 = vsyncpa [#allocation11], 0 }
   0xb   :  { %19 = vsyncpa [#allocation14], 0 }
   0xc   :  { %20 = vsyncpa [#allocation17], 0 }
   0xd   :  { %21 = vsyncpa [#allocation20], 0 }
   0xe   :  { %22 = vsyncpa [#allocation23], 0 }
   0xf   :  { %23 = vsyncpa [#allocation9], 0 }
  0x10   :  { %25 = vsyncpa [#allocation9 + $0x1], 0  ;;  %s3701_s13 = smov 0   ;;  %s3703_s14 = smov 0  }
  0x11   :  { %s3705_s15 = smov 0   ;;  %s3707_s16 = smov 0  }
  0x12   :  { %s3709_s17 = smov 0   ;;  %s3711_s18 = smov 0  }
  0x13   :  { %s3713_s19 = smov 0   ;;  %s3715_s20 = smov 0  }
  0x14 LB: > { %4546 = sst [smem:[#allocation32_spill]] %s3600_s16  ;;  %s4525_s21 = sadd.s32 4294967295, %s3616_s20   ;;  %s3616_s20 = sphi %s3715_s20, %s31_s20   ;;  %s3612_s19 = sphi %s3713_s19, %s4594_s19   ;;  %s3608_s18 = sphi %s3711_s18, %s4593_s18   ;;  %s3604_s17 = sphi %s3709_s17, %s4592_s17   ;;  %s3600_s16 = sphi %s3707_s16, %s4591_s16   ;;  %s3596_s15 = sphi %s3705_s15, %s4590_s15   ;;  %s3592_s14 = sphi %s3703_s14, %s4589_s14   ;;  %s3588_s13 = sphi %s3701_s13, %s4588_s13  }
  0x15   : > { %4547 = sst [smem:[#allocation33_spill]] %s3604_s17  ;;  %p2538_p0 = scmp.ge.s32.totalorder %s3616_s20, 1 }
  0x16   : > { %p3745_p1 = scmp.eq.s32.totalorder %s4525_s21, 0  ;;  %p293_p2 = scmp.lt.s32.totalorder %s3616_s20, 9 }
  0x17   : > { %s3618_s24 = smov [#allocation10]   ;;  %s3619_s27 = smov [#allocation13]  }
  0x18   : > { %s4548_s22 = scalar_select %p3745_p1, 1, 0 }
  0x19   : > { %p3750_p3 = pnand %p2538_p0, %p293_p2  ;;  %s305_s25 = sshll.u32 %s3618_s24, 4  ;;  %s3754_s25 = int_to_ptr.vmem [resolvable:$true] %s305_s25 }
  0x1a   : > { %4549 = sst [smem:[#allocation34_spill]] %s4548_s22  ;;  %s330_s28 = sshll.u32 %s3619_s27, 4  ;;  %s3764_s28 = int_to_ptr.vmem [resolvable:$true] %s330_s28 }
  0x1b   : > { %s4550_s23 = scalar_select %p3750_p3, 1, 0 }
  0x1c   : > { %p2930_p4 = pneg %p3750_p3  ;;  %s3620_s29 = smov [#allocation16]  }
  0x1d   : > { %4551 = sst [smem:[#allocation35_spill]] %s4550_s23  ;;  %s3766_s30 = sshll.u32 %s3620_s29, 4  ;;  %s355_s30 = int_to_ptr.vmem [resolvable:$true] %s3766_s30 }
  0x1e   : > { %p3760_p5 = pnand %p2930_p4, %p3745_p1  ;;  %s4553_s1 = sld [smem:[#allocation37_spill]] }
  0x20   : > { %p3776_p7 = pneg %p3760_p5 }
  0x24   : > { %s3216_s24 = scalar_lea.hbm %s4553_s1, 1024 }
  0x25   : > { %p3217_p6 = scmp.ne.s32.totalorder %s4553_s1, %s3216_s24  ;;  %p3223_p10 = scmp.lt.u32.totalorder %s3216_s24, %s4553_s1 }
  0x27   : > { %p3219_p8 = pnand %p3776_p7, %p3217_p6 }
  0x29   : > { %p3220_p9 = pneg %p3219_p8 }
  0x2b   : > { %p3225_p11 = pnand %p3223_p10, %p3220_p9 }
  0x2d   : > { %3228 = shalt.err (!%p3225_p11)
}
  0x2e   : > { %s3229_s10 = scalar_lea.vmem %s3754_s25, 1024  ;;  %p3237_p2 = scmp.lt.s32.totalorder %s3754_s25, %s3754_s25 }
  0x2f   : > { %p3230_p12 = scmp.ne.s32.totalorder %s3754_s25, %s3229_s10  ;;  %p3238_p4 = scmp.lt.s32.totalorder %s3229_s10, %s3229_s10 }
  0x31   : > { %p3232_p13 = pnand %p3230_p12, %p3776_p7  ;;  %p3239_p6 = por %p3238_p4, %p3237_p2 }
  0x33   : > { %p3233_p0 = pneg %p3232_p13 }
  0x35   : > { %p3240_p8 = pnand %p3239_p6, %p3233_p0 }
  0x37   : > { %3243 = shalt.err (!%p3240_p8)
}
  0x38   : > { %s4534_s21 = smov 64   ;;  %s4536_s11 = smov 4  }
  0x39   : > { %2933 = dma.hbm_to_vmem [thread:$0]  (!%p3760_p5), %s4553_s1, 1024, %s3754_s25, [#allocation11], %s4534_s21, %s4534_s21, %s4536_s11  }
  0x3a   : > { %s4555_s3 = sld [smem:[#allocation39_spill]] }
  0x40   : > { %s3244_s10 = scalar_lea.hbm %s4555_s3, 16 }
  0x41   : > { %p3245_p9 = scmp.ne.s32.totalorder %s4555_s3, %s3244_s10  ;;  %p3251_p12 = scmp.lt.u32.totalorder %s3244_s10, %s4555_s3 }
  0x43   : > { %p3247_p10 = pnand %p3245_p9, %p3776_p7 }
  0x45   : > { %p3248_p11 = pneg %p3247_p10 }
  0x47   : > { %p3253_p13 = pnand %p3251_p12, %p3248_p11 }
  0x49   : > { %3256 = shalt.err (!%p3253_p13)
}
  0x4a   : > { %s3257_s25 = scalar_lea.vmem %s3764_s28, 16  ;;  %s3264_s16 = scalar_lea.vmem %s3764_s28, 32 }
  0x4b   : > { %p3258_p0 = scmp.ne.s32.totalorder %s3764_s28, %s3257_s25  ;;  %p3265_p6 = scmp.lt.s32.totalorder %s3764_s28, %s3764_s28 }
  0x4c   : > { %p3266_p8 = scmp.lt.s32.totalorder %s3264_s16, %s3257_s25 }
  0x4d   : > { %p3260_p2 = pnand %p3258_p0, %p3776_p7 }
  0x4e   : > { %p3267_p9 = por %p3266_p8, %p3265_p6 }
  0x4f   : > { %p3261_p4 = pneg %p3260_p2 }
  0x51   : > { %p3268_p10 = pnand %p3267_p9, %p3261_p4 }
  0x53   : > { %3271 = shalt.err (!%p3268_p10)
}
  0x54   : > { %2939 = dma.hbm_to_vmem [thread:$0]  (!%p3760_p5), %s4555_s3, 16, %s3764_s28, [#allocation14]  }
  0x55   : > { %s4556_s5 = sld [smem:[#allocation41_spill]] }
  0x5b   : > { %s3272_s24 = scalar_lea.hbm %s4556_s5, 16 }
  0x5c   : > { %p3273_p11 = scmp.ne.s32.totalorder %s4556_s5, %s3272_s24  ;;  %p3279_p0 = scmp.lt.u32.totalorder %s3272_s24, %s4556_s5 }
  0x5e   : > { %p3275_p12 = pnand %p3273_p11, %p3776_p7 }
  0x60   : > { %p3276_p13 = pneg %p3275_p12 }
  0x62   : > { %p3281_p2 = pnand %p3279_p0, %p3276_p13 }
  0x64   : > { %3284 = shalt.err (!%p3281_p2)
}
  0x65   : > { %s3285_s16 = scalar_lea.vmem %s355_s30, 16  ;;  %s3292_s28 = scalar_lea.vmem %s355_s30, 32 }
  0x66   : > { %p3286_p4 = scmp.ne.s32.totalorder %s355_s30, %s3285_s16  ;;  %p3293_p9 = scmp.lt.s32.totalorder %s355_s30, %s355_s30 }
  0x67   : > { %p3294_p10 = scmp.lt.s32.totalorder %s3292_s28, %s3285_s16 }
  0x68   : > { %p3288_p6 = pnand %p3286_p4, %p3776_p7 }
  0x69   : > { %p3295_p3 = por %p3294_p10, %p3293_p9 }
  0x6a   : > { %p3289_p8 = pneg %p3288_p6 }
  0x6c   : > { %p3296_p1 = pnand %p3295_p3, %p3289_p8 }
  0x6e   : > { %3299 = shalt.err (!%p3296_p1)
}
  0x6f   : > { %2945 = dma.hbm_to_vmem [thread:$0]  (!%p3760_p5), %s4556_s5, 16, %s355_s30, [#allocation17]  }
  0x70   : > { %s3623_s23 = smov [#allocation19]   ;;  %s3624_s24 = smov [#allocation12]  }
  0x71   : > { %s375_s12 = sshll.u32 %s3623_s23, 4  ;;  %s319_s27 = sshll.u32 %s3624_s24, 4  ;;  %s376_s12 = int_to_ptr.vmem [resolvable:$true] %s375_s12  ;;  %s320_s27 = int_to_ptr.vmem [resolvable:$true] %s319_s27 }
  0x72   : > { %s3300_s25 = scalar_lea.hbm %s4521_s7, 1024 }
  0x73   : > { %p3301_p1 = scmp.ne.s32.totalorder %s4521_s7, %s3300_s25  ;;  %p3307_p12 = scmp.lt.u32.totalorder %s3300_s25, %s4521_s7 }
  0x75   : > { %p3303_p3 = pnand %p3301_p1, %p3776_p7 }
  0x77   : > { %p3304_p11 = pneg %p3303_p3 }
  0x79   : > { %p3309_p13 = pnand %p3307_p12, %p3304_p11 }
  0x7b   : > { %3312 = shalt.err (!%p3309_p13)
}
  0x7c   : > { %s3313_s30 = scalar_lea.vmem %s376_s12, 1024  ;;  %p3321_p6 = scmp.lt.s32.totalorder %s376_s12, %s376_s12 }
  0x7d   : > { %p3314_p0 = scmp.ne.s32.totalorder %s376_s12, %s3313_s30  ;;  %p3322_p8 = scmp.lt.s32.totalorder %s3313_s30, %s3313_s30 }
  0x7f   : > { %p3316_p2 = pnand %p3314_p0, %p3776_p7  ;;  %p3323_p9 = por %p3322_p8, %p3321_p6 }
  0x81   : > { %p3317_p4 = pneg %p3316_p2 }
  0x83   : > { %p3324_p10 = pnand %p3323_p9, %p3317_p4 }
  0x85   : > { %3327 = shalt.err (!%p3324_p10)
}
  0x86   : > { %s4557_s22 = smov 64   ;;  %s4558_s2 = sld [smem:[#allocation38_spill]] }
  0x87   : > { %2951 = dma.hbm_to_vmem [thread:$0]  (!%p3760_p5), %s4521_s7, 1024, %s376_s12, [#allocation20], %s4557_s22, %s4557_s22, %s4536_s11  }
  0x8c   : > { %s3328_s10 = scalar_lea.hbm %s4558_s2, 16 }
  0x8d   : > { %p3329_p1 = scmp.ne.s32.totalorder %s4558_s2, %s3328_s10  ;;  %p3335_p12 = scmp.lt.u32.totalorder %s3328_s10, %s4558_s2 }
  0x8f   : > { %p3331_p3 = pnand %p3329_p1, %p3776_p7 }
  0x91   : > { %p3332_p11 = pneg %p3331_p3 }
  0x93   : > { %p3337_p13 = pnand %p3335_p12, %p3332_p11 }
  0x95   : > { %3340 = shalt.err (!%p3337_p13)
}
  0x96   : > { %s3341_s30 = scalar_lea.vmem %s320_s27, 16  ;;  %s3348_s12 = scalar_lea.vmem %s320_s27, 32 }
  0x97   : > { %p3342_p0 = scmp.ne.s32.totalorder %s320_s27, %s3341_s30  ;;  %p3349_p6 = scmp.lt.s32.totalorder %s320_s27, %s320_s27 }
  0x98   : > { %p3350_p8 = scmp.lt.s32.totalorder %s3348_s12, %s3341_s30 }
  0x99   : > { %p3344_p2 = pnand %p3342_p0, %p3776_p7 }
  0x9a   : > { %p3351_p9 = por %p3350_p8, %p3349_p6 }
  0x9b   : > { %p3345_p4 = pneg %p3344_p2 }
  0x9d   : > { %p3352_p10 = pnand %p3351_p9, %p3345_p4 }
  0x9f   : > { %3355 = shalt.err (!%p3352_p10)
}
  0xa0   : > { %2936 = dma.hbm_to_vmem [thread:$0]  (!%p3760_p5), %s4558_s2, 16, %s320_s27, [#allocation11]  }
  0xa1   : > { %s3625_s24 = smov [#allocation15]   ;;  %s3626_s10 = smov [#allocation18]  }
  0xa2   : > { %s340_s29 = sshll.u32 %s3625_s24, 4  ;;  %s365_s25 = sshll.u32 %s3626_s10, 4  ;;  %s341_s29 = int_to_ptr.vmem [resolvable:$true] %s340_s29  ;;  %s366_s25 = int_to_ptr.vmem [resolvable:$true] %s365_s25 }
  0xa3   : > { %s4559_s4 = sld [smem:[#allocation40_spill]] }
  0xa9   : > { %s3356_s0 = scalar_lea.hbm %s4559_s4, 1024 }
  0xaa   : > { %p3357_p1 = scmp.ne.s32.totalorder %s4559_s4, %s3356_s0  ;;  %p3363_p12 = scmp.lt.u32.totalorder %s3356_s0, %s4559_s4 }
  0xac   : > { %p3359_p3 = pnand %p3357_p1, %p3776_p7 }
  0xae   : > { %p3360_p11 = pneg %p3359_p3 }
  0xb0   : > { %p3365_p13 = pnand %p3363_p12, %p3360_p11 }
  0xb2   : > { %3368 = shalt.err (!%p3365_p13)
}
  0xb3   : > { %s3369_s27 = scalar_lea.vmem %s341_s29, 1024  ;;  %p3377_p6 = scmp.lt.s32.totalorder %s341_s29, %s341_s29 }
  0xb4   : > { %p3370_p0 = scmp.ne.s32.totalorder %s341_s29, %s3369_s27  ;;  %p3378_p8 = scmp.lt.s32.totalorder %s3369_s27, %s3369_s27 }
  0xb6   : > { %p3372_p2 = pnand %p3370_p0, %p3776_p7  ;;  %p3379_p9 = por %p3378_p8, %p3377_p6 }
  0xb8   : > { %p3373_p4 = pneg %p3372_p2 }
  0xba   : > { %p3380_p10 = pnand %p3379_p9, %p3373_p4 }
  0xbc   : > { %3383 = shalt.err (!%p3380_p10)
}
  0xbd   : > { %s4560_s23 = smov 4   ;;  %s3384_s28 = scalar_lea.hbm %s4520_s6, 16 }
  0xbe   : > { %2942 = dma.hbm_to_vmem [thread:$0]  (!%p3760_p5), %s4559_s4, 1024, %s341_s29, [#allocation14], %s4557_s22, %s4557_s22, %s4560_s23  }
  0xbf   : > { %p3385_p1 = scmp.ne.s32.totalorder %s4520_s6, %s3384_s28  ;;  %p3391_p12 = scmp.lt.u32.totalorder %s3384_s28, %s4520_s6 }
  0xc1   : > { %p3387_p3 = pnand %p3385_p1, %p3776_p7 }
  0xc3   : > { %p3388_p11 = pneg %p3387_p3 }
  0xc5   : > { %p3393_p13 = pnand %p3391_p12, %p3388_p11 }
  0xc7   : > { %3396 = shalt.err (!%p3393_p13)
}
  0xc8   : > { %s3397_s27 = scalar_lea.vmem %s366_s25, 16  ;;  %s3404_s22 = scalar_lea.vmem %s366_s25, 32 }
  0xc9   : > { %p3398_p0 = scmp.ne.s32.totalorder %s366_s25, %s3397_s27  ;;  %p3405_p6 = scmp.lt.s32.totalorder %s366_s25, %s366_s25 }
  0xca   : > { %p3406_p8 = scmp.lt.s32.totalorder %s3404_s22, %s3397_s27 }
  0xcb   : > { %p3400_p2 = pnand %p3398_p0, %p3776_p7 }
  0xcc   : > { %p3407_p9 = por %p3406_p8, %p3405_p6 }
  0xcd   : > { %p3401_p4 = pneg %p3400_p2 }
  0xcf   : > { %p3408_p10 = pnand %p3407_p9, %p3401_p4 }
  0xd1   : > { %3411 = shalt.err (!%p3408_p10)
}
  0xd2   : > { %2948 = dma.hbm_to_vmem [thread:$0]  (!%p3760_p5), %s4520_s6, 16, %s366_s25, [#allocation17]  }
  0xd3   : > { %s3627_s11 = smov [#allocation21]   ;;  %s3628_s10 = smov [#allocation22]  }
  0xd4   : > { %s389_s24 = sshll.u32 %s3627_s11, 4  ;;  %s400_s16 = sshll.u32 %s3628_s10, 4  ;;  %s390_s24 = int_to_ptr.vmem [resolvable:$true] %s389_s24  ;;  %s401_s16 = int_to_ptr.vmem [resolvable:$true] %s400_s16 }
  0xd5   : > { %s3412_s30 = scalar_lea.hbm %s4522_s8, 16 }
  0xd6   : > { %p3413_p1 = scmp.ne.s32.totalorder %s4522_s8, %s3412_s30  ;;  %p3419_p12 = scmp.lt.u32.totalorder %s3412_s30, %s4522_s8 }
  0xd8   : > { %p3415_p3 = pnand %p3413_p1, %p3776_p7 }
  0xda   : > { %p3416_p11 = pneg %p3415_p3 }
  0xdc   : > { %p3421_p13 = pnand %p3419_p12, %p3416_p11 }
  0xde   : > { %3424 = shalt.err (!%p3421_p13)
}
  0xdf   : > { %s3425_s25 = scalar_lea.vmem %s390_s24, 16  ;;  %s3432_s29 = scalar_lea.vmem %s390_s24, 32 }
  0xe0   : > { %p3426_p0 = scmp.ne.s32.totalorder %s390_s24, %s3425_s25  ;;  %p3433_p6 = scmp.lt.s32.totalorder %s390_s24, %s390_s24 }
  0xe1   : > { %p3434_p8 = scmp.lt.s32.totalorder %s3432_s29, %s3425_s25 }
  0xe2   : > { %p3428_p2 = pnand %p3426_p0, %p3776_p7 }
  0xe3   : > { %p3435_p9 = por %p3434_p8, %p3433_p6 }
  0xe4   : > { %p3429_p4 = pneg %p3428_p2 }
  0xe6   : > { %p3436_p10 = pnand %p3435_p9, %p3429_p4 }
  0xe8   : > { %3439 = shalt.err (!%p3436_p10)
}
  0xe9   : > { %2954 = dma.hbm_to_vmem [thread:$0]  (!%p3760_p5), %s4522_s8, 16, %s390_s24, [#allocation20]  }
  0xea   : > { %s3440_s0 = scalar_lea.hbm %s4523_s9, 16 }
  0xeb   : > { %p3441_p1 = scmp.ne.s32.totalorder %s4523_s9, %s3440_s0  ;;  %p3447_p12 = scmp.lt.u32.totalorder %s3440_s0, %s4523_s9 }
  0xed   : > { %p3443_p3 = pnand %p3441_p1, %p3776_p7 }
  0xef   : > { %p3444_p11 = pneg %p3443_p3 }
  0xf1   : > { %p3449_p13 = pnand %p3447_p12, %p3444_p11 }
  0xf3   : > { %3452 = shalt.err (!%p3449_p13)
}
  0xf4   : > { %s3453_s22 = scalar_lea.vmem %s401_s16, 16  ;;  %s3460_s24 = scalar_lea.vmem %s401_s16, 32 }
  0xf5   : > { %p3454_p0 = scmp.ne.s32.totalorder %s401_s16, %s3453_s22  ;;  %p3461_p6 = scmp.lt.s32.totalorder %s401_s16, %s401_s16 }
  0xf6   : > { %p3462_p8 = scmp.lt.s32.totalorder %s3460_s24, %s3453_s22 }
  0xf7   : > { %p3456_p2 = pnand %p3454_p0, %p3776_p7 }
  0xf8   : > { %p3463_p9 = por %p3462_p8, %p3461_p6 }
  0xf9   : > { %p3457_p4 = pneg %p3456_p2 }
  0xfb   : > { %p3464_p10 = pnand %p3463_p9, %p3457_p4 }
  0xfd   : > { %3467 = shalt.err (!%p3464_p10)
}
  0xfe   : > { %2957 = dma.hbm_to_vmem [thread:$0]  (!%p3760_p5), %s4523_s9, 16, %s401_s16, [#allocation23]  }
  0xff   : > { %s2537_s17 = sadd.s32 4294967294, %s3616_s20   ;;  %s4561_s23 = sld [smem:[#allocation34_spill]] }
 0x100   : > { %s40_s11 = sadd.s32 1, %s3608_s18  ;;  %s43_s26 = sadd.s32 1, %s3612_s19 }
 0x101   : > { %p41_p7 = scmp.ge.s32.totalorder %s40_s11, 4  ;;  %s52_s10 = sadd.s32 1, %s3596_s15 }
 0x102   : > { %p59_p1 = scmp.ne.s32.totalorder %s3596_s15, %s3592_s14  ;;  %p60_p3 = scmp.eq.s32.totalorder %s3616_s20, 0 }
 0x103   : > { %s4596_s11 = smov (%p41_p7, %s40_s11), 0  ;;  %s4598_s26 = smov (!%p41_p7, %s43_s26), %s3612_s19 }
 0x104   : > { %s47_s28 = ssub.s32 %s3608_s18, %s4596_s11  ;;  %p3969_p11 = por %p60_p3, %p59_p1 }
 0x105   : > { %p45_p5 = scmp.ge.s32.totalorder %s4598_s26, 2  ;;  %p65_p12 = scmp.ne.s32.totalorder %s3592_s14, %s3588_s13 }
 0x106   : > { %s4563_s16 = sadd.s32 4294967295, %s3616_s20   ;;  %p286_p0 = scmp.eq.s32.totalorder %s2537_s17, 7 }
 0x107   : > { %p280_p13 = scmp.eq.s32.totalorder %s4563_s16, 7  ;;  %s4600_s26 = smov (%p45_p5, %s4598_s26), 0 }
 0x108   : > { %p4564_p2 = scmp.ne.s32.totalorder %s4561_s23, 0  ;;  %s48_s21 = ssub.s32 %s3612_s19, %s4600_s26 }
 0x109   : > { %p3985_p6 = por %p280_p13, %p59_p1  ;;  %p3991_p8 = por %p286_p0, %p65_p12 }
 0x10a   : > { %p3981_p4 = por %p4564_p2, %p65_p12  ;;  %s49_s22 = sor.u32 %s48_s21, %s47_s28 }
 0x10b   : > { %s4566_s12 = scalar_select %p3985_p6, 1, 0 }
 0x10c   : > { %s4567_s27 = scalar_select %p3991_p8, 1, 0 }
 0x10d   : > { %p2975_p9 = scmp.lt.s32.totalorder %s3616_s20, 8  ;;  %p50_p10 = scmp.eq.s32.totalorder %s49_s22, 0 }
 0x10e   : > { %s411_s24 = sand.u32 1, %s3596_s15   ;;  %s2550_s17 = sshll.u32 %s3612_s19, 3 }
 0x10f   : > { %s2549_s25 = sshll.u32 %s411_s24, 6  ;;  %s2551_s23 = sshll.u32 %s3608_s18, 4 }
 0x110   : > { %s3998_s29 = scalar_select %p50_p10, %s3596_s15, %s52_s10  }
 0x111   : > { %s415_s16 = scalar_lea.vmem [#allocation7], %s2549_s25  ;;  %s421_s2 = sadd.s32 %s2551_s23, %s2550_s17 }
 0x112   : > { %s424_s1 = sshll.u32 %s415_s16, 4  ;;  %s2552_s3 = sshll.u32 %s421_s2, 7  ;;  %s4002_s1 = int_to_ptr.vmem [resolvable:$true] %s424_s1 }
 0x113   : > { %p4006_p7 = pnand %p2975_p9, %p3969_p11  ;;  %s4569_s22 = sld [smem:[#allocation36_spill]] }
 0x114   : > { %s4015_s25 = scalar_lea.sflag [#allocation8], %s411_s24 }
 0x115   : > { %p3470_p3 = pneg %p4006_p7 }
 0x119   : > { %s4013_s10 = scalar_lea.hbm %s4569_s22, %s2552_s3  ;;  %s3473_s23 = scalar_lea.hbm %s4569_s22, 8192 }
 0x11a   : > { %s3468_s17 = scalar_lea.hbm %s4013_s10, 1024  ;;  %p3474_p12 = scmp.lt.u32.totalorder %s4013_s10, %s4569_s22 }
 0x11b   : > { %p3469_p1 = scmp.ne.s32.totalorder %s4013_s10, %s3468_s17  ;;  %p3475_p13 = scmp.lt.u32.totalorder %s3473_s23, %s3468_s17 }
 0x11c   : > { %p3477_p2 = scmp.lt.u32.totalorder %s3468_s17, %s4013_s10 }
 0x11d   : > { %p3471_p11 = pnand %p3470_p3, %p3469_p1  ;;  %p3476_p0 = por %p3475_p13, %p3474_p12 }
 0x11f   : > { %p3472_p5 = pneg %p3471_p11  ;;  %p3478_p9 = por %p3477_p2, %p3476_p0 }
 0x121   : > { %p3479_p10 = pnand %p3478_p9, %p3472_p5 }
 0x123   : > { %3482 = shalt.err (!%p3479_p10)
}
 0x124   : > { %s3483_s24 = scalar_lea.vmem %s4002_s1, 1024  ;;  %s3629_s28 = smov [#allocation7]  }
 0x125   : > { %p3484_p1 = scmp.ne.s32.totalorder %s4002_s1, %s3483_s24  ;;  %s3488_s21 = sshll.u32 %s3629_s28, 4  ;;  %s3489_s21 = int_to_ptr.vmem [resolvable:$false] %s3488_s21 }
 0x126   : > { %s3490_s2 = scalar_lea.vmem %s3489_s21, 2048  ;;  %p3491_p6 = scmp.lt.s32.totalorder %s4002_s1, %s3489_s21 }
 0x127   : > { %p3486_p11 = pnand %p3484_p1, %p3470_p3  ;;  %p3492_p12 = scmp.lt.s32.totalorder %s3490_s2, %s3483_s24 }
 0x129   : > { %p3487_p8 = pneg %p3486_p11  ;;  %p3493_p13 = por %p3492_p12, %p3491_p6 }
 0x12b   : > { %p3494_p0 = pnand %p3493_p13, %p3487_p8 }
 0x12d   : > { %3497 = shalt.err (!%p3494_p0)
}
 0x12e   : > { %s3630_s17 = smov 128   ;;  %s3631_s0 = smov 8  }
 0x12f   : > { %2961 = dma.hbm_to_vmem [thread:$0]  (!%p4006_p7), %s4013_s10, 1024, %s4002_s1, %s4015_s25, %s3630_s17, %s3630_s17, %s3631_s0  }
 0x130   : > { %s4570_s23 = sld [smem:[#allocation35_spill]] }
 0x136   : > { %p4571_p3 = scmp.ne.s32.totalorder %s4570_s23, 0 }
 0x137   : > { %s4046_s3 = sand.u32 (!%p4571_p3), 1, %s3592_s14  }
 0x138   : > { %436 = sbr.rel (%p4571_p3) target bundleno = 1326 (0x52e), region = 60  ;;  %s2554_s16 = sshll.u32 (!%p4571_p3), %s4046_s3, 6 }
 0x139   : > { %s439_s24 = scalar_lea.sflag (!%p4571_p3), [#allocation8], %s4046_s3  ;;  %s4050_s28 = scalar_lea.vmem (!%p4571_p3), [#allocation7], %s2554_s16 }
 0x13f   : > { %3559 = dma.done.wait (%p3981_p4), %s439_s24, 1024  }
 0x140   : > { %3561 = vsyncadd (%p3981_p4), %s439_s24, 4294966272  ;;  %s4572_s4 = sld [smem:[#allocation34_spill]] }
 0x146   : > { %p4573_p6 = scmp.ne.s32.totalorder %s4572_s4, 0 }
 0x148   : > { %3563 = dma.done.wait (%p4573_p6), [#allocation11], 1040  }
 0x149   : > { %3565 = vsyncadd (%p4573_p6), [#allocation11], 4294966256 }
 0x14a   : > { %3567 = dma.done.wait (%p4573_p6), [#allocation14], 1040  }
 0x14b   : > { %3569 = vsyncadd (%p4573_p6), [#allocation14], 4294966256 }
 0x14c   : > { %3571 = dma.done.wait (%p4573_p6), [#allocation17], 32  }
 0x14d   : > { %3573 = vsyncadd (%p4573_p6), [#allocation17], 4294967264 }
 0x14e   : > { %3575 = dma.done.wait (%p4573_p6), [#allocation20], 1040  }
 0x14f   : > { %3577 = vsyncadd (%p4573_p6), [#allocation20], 4294966256 }
 0x150   : > { %3579 = dma.done.wait (%p4573_p6), [#allocation23], 16  }
 0x151   : > { %3581 = vsyncadd (%p4573_p6), [#allocation23], 4294967280  ;;  %s4076_s1 = scalar_lea.vmem [#allocation24], %s2554_s16  ;;  %s4574_s30 = sld [smem:[#allocation32_spill]] }
 0x157   : > { %p2565_p4 = scmp.ne.s32.totalorder %s4574_s30, 0 }
 0x158   : > { %vm544_vm0 = vcmask (!%p2565_p4), 64512   ;;  %v3632_v0 = vmov (!%p2565_p4), 0.0   ;;  %v3633_v1 = vmov (!%p2565_p4), 0  }
 0x159   : > { %519 = sbr.rel (%p2565_p4) target bundleno = 364 (0x16c), region = 104  ;;  %520 = vst [vmem:[#allocation2] sm:$0xff] (!%p2565_p4), %v3632_v0  ;;  %521 = vst [vmem:[#allocation2 + $0x8] sm:$0xff] (!%p2565_p4), %v3632_v0 }
 0x15a   : > { %522 = vst [vmem:[#allocation2 + $0x10] sm:$0xff] (!%p2565_p4), %v3632_v0  ;;  %523 = vst [vmem:[#allocation2 + $0x18] sm:$0xff] (!%p2565_p4), %v3632_v0 }
 0x15b   : > { %524 = vst [vmem:[#allocation2 + $0x20] sm:$0xff] (!%p2565_p4), %v3632_v0  ;;  %525 = vst [vmem:[#allocation2 + $0x28] sm:$0xff] (!%p2565_p4), %v3632_v0 }
 0x15c   : > { %526 = vst [vmem:[#allocation2 + $0x30] sm:$0xff] (!%p2565_p4), %v3632_v0  ;;  %527 = vst [vmem:[#allocation2 + $0x38] sm:$0xff] (!%p2565_p4), %v3632_v0 }
 0x15d   : > { %528 = vst [vmem:[#allocation3] sm:$0xff] (!%p2565_p4), %v3632_v0  ;;  %529 = vst [vmem:[#allocation3 + $0x8] sm:$0xff] (!%p2565_p4), %v3632_v0 }
 0x15e   : > { %530 = vst [vmem:[#allocation3 + $0x10] sm:$0xff] (!%p2565_p4), %v3632_v0  ;;  %531 = vst [vmem:[#allocation3 + $0x18] sm:$0xff] (!%p2565_p4), %v3632_v0 }
 0x15f   : > { %532 = vst [vmem:[#allocation3 + $0x20] sm:$0xff] (!%p2565_p4), %v3632_v0  ;;  %533 = vst [vmem:[#allocation3 + $0x28] sm:$0xff] (!%p2565_p4), %v3632_v0 }
 0x160   : > { %534 = vst [vmem:[#allocation3 + $0x30] sm:$0xff] %v3632_v0  ;;  %535 = vst [vmem:[#allocation3 + $0x38] sm:$0xff] %v3632_v0 }
 0x161   : > { %536 = vst [vmem:[#allocation4] sm:$0xff] %v3632_v0  ;;  %537 = vst [vmem:[#allocation4 + $0x8] sm:$0xff] %v3632_v0 }
 0x162   : > { %538 = vst [vmem:[#allocation4 + $0x10] sm:$0xff] %v3632_v0  ;;  %539 = vst [vmem:[#allocation4 + $0x18] sm:$0xff] %v3632_v0 }
 0x163   : > { %540 = vst [vmem:[#allocation4 + $0x20] sm:$0xff] %v3632_v0  ;;  %541 = vst [vmem:[#allocation4 + $0x28] sm:$0xff] %v3632_v0 }
 0x164   : > { %542 = vst [vmem:[#allocation4 + $0x30] sm:$0xff] %v3632_v0  ;;  %543 = vst [vmem:[#allocation4 + $0x38] sm:$0xff] %v3632_v0 }
 0x165   : > { %545 = vst.msk [vmem:[#allocation5] sm:$0xff] %vm544_vm0, %v3633_v1  ;;  %546 = vst.msk [vmem:[#allocation5 + $0x8] sm:$0xff] %vm544_vm0, %v3633_v1 }
 0x166   : > { %547 = vst.msk [vmem:[#allocation5 + $0x10] sm:$0xff] %vm544_vm0, %v3633_v1  ;;  %548 = vst.msk [vmem:[#allocation5 + $0x18] sm:$0xff] %vm544_vm0, %v3633_v1 }
 0x167   : > { %549 = vst.msk [vmem:[#allocation5 + $0x20] sm:$0xff] %vm544_vm0, %v3633_v1  ;;  %550 = vst.msk [vmem:[#allocation5 + $0x28] sm:$0xff] %vm544_vm0, %v3633_v1 }
 0x168   : > { %551 = vst.msk [vmem:[#allocation5 + $0x30] sm:$0xff] %vm544_vm0, %v3633_v1  ;;  %552 = vst.msk [vmem:[#allocation5 + $0x38] sm:$0xff] %vm544_vm0, %v3633_v1 }
 0x169   : > { %553 = vst.msk [vmem:[#allocation5 + $0x40] sm:$0xff] %vm544_vm0, %v3633_v1  ;;  %554 = vst.msk [vmem:[#allocation5 + $0x48] sm:$0xff] %vm544_vm0, %v3633_v1 }
 0x16a   : > { %555 = vst [vmem:[#allocation6] sm:$0xff] %v3633_v1  ;;  %556 = vst [vmem:[#allocation6 + $0x8] sm:$0xff] %v3633_v1 }
 0x16b   : > { %557 = vst [vmem:[#allocation6 + $0x10] sm:$0xff] %v3633_v1  ;;  %558 = vst [vmem:[#allocation6 + $0x18] sm:$0xff] %v3633_v1 }
 0x16c PF: > { %v3076_v2 = vld [vmem:[#allocation10] sm:$0xff]   ;;  %v3077_v3 = vld [vmem:[#allocation10 + $0x8] sm:$0xff]   ;;  %v3078_v4 = vld [vmem:[#allocation10 + $0x10] sm:$0xff]   ;;  %vm851_vm1 = vcmask 61440   ;;  %vm852_vm2 = vsmask.f32 4354 }
 0x16d   : > { %2802 = vmatprep.subr.bf16.mxu0 %v3076_v2  ;;  %v3079_v5 = vld [vmem:[#allocation10 + $0x18] sm:$0xff]   ;;  %v559_v6 = vld [vmem:[%s4050_s28] sm:$0xff]  ;;  %v560_v7 = vld [vmem:[%s4050_s28 + $0x8] sm:$0xff]  ;;  %vm1155_vm7 = vcmask 1042432   ;;  %vm1156_vm8 = vcmask 1046532   ;;  %s3635_s10 = smov 24  }
 0x16e   : > { %2803 = vmatpush3.bf16.msra.mxu0 %v3076_v2  ;;  %v567_v8 = vpack.c.bf16 %v560_v7, %v559_v6  ;;  %v3080_v9 = vld [vmem:[#allocation10 + $0x20] sm:$0xff]   ;;  %v3081_v10 = vld [vmem:[#allocation10 + $0x28] sm:$0xff]   ;;  %v3082_v11 = vld [vmem:[#allocation10 + $0x30] sm:$0xff]   ;;  %vm963_vm10 = vsmask.f32 3328  ;;  %s3636_s25 = smov 16  }
 0x16f   : > { %2804 = vmatprep.subr.bf16.mxu0 %v3077_v3  ;;  %v3083_v12 = vld [vmem:[#allocation10 + $0x38] sm:$0xff]   ;;  %v561_v13 = vld [vmem:[%s4050_s28 + $0x10] sm:$0xff]  ;;  %v563_v15 = vld [vmem:[%s4050_s28 + $0x20] sm:$0xff]  ;;  %vm964_vm11 = vsmask.f32 7440  ;;  %s3637_s21 = smov 48  }
 0x170   : > { %2818 = vmatprep.mubr.bf16.mxu0 %v567_v8  ;;  %v562_v14 = vld [vmem:[%s4050_s28 + $0x18] sm:$0xff]  ;;  %v564_v16 = vld [vmem:[%s4050_s28 + $0x28] sm:$0xff]  ;;  %v565_v19 = vld [vmem:[%s4050_s28 + $0x30] sm:$0xff]  ;;  %v3634_v8 = vmov 0.0   ;;  %s3638_s2 = smov 40   ;;  %s3639_s17 = smov 64  }
 0x171   : > { %v568_v17 = vpack.c.bf16 %v562_v14, %v561_v13  ;;  %v569_v18 = vpack.c.bf16 %v564_v16, %v563_v15  ;;  %v566_v20 = vld [vmem:[%s4050_s28 + $0x38] sm:$0xff]  ;;  %v915_v22 = vld [vmem:[#allocation5] sm:$0x1f]  ;;  %v4097_v33 = vld [vmem:[#allocation12] ss:$0 sm:$0xff]  ;;  %s4538_s0 = smov 8  }
 0x172   : > { %2805 = vmatpush3.bf16.msra.mxu0 %v3077_v3  ;;  %v570_v21 = vpack.c.bf16 %v566_v20, %v565_v19  ;;  %v1615_v23 = vld [vmem:[#allocation5 + $0x48] sm:$0x1f]  ;;  %v2580_v24 = vcombine.low %v915_v22, %v915_v22  ;;  %v1107_v30 = vld [vmem:[#allocation5] sm:$0x1e]  ;;  %v2581_v34 = vcombine.high %v915_v22, %v915_v22  ;;  %v4099_v39 = vld [vmem:[#allocation13] ss:$0 sm:$0xff] }
 0x173   : > { %2806 = vmatprep.subr.bf16.mxu0 %v3078_v4  ;;  %v2698_v25 = vcombine.low %v1615_v23, %v1615_v23  ;;  %v2699_v37 = vcombine.high %v1615_v23, %v1615_v23  ;;  %v2600_v40 = vcombine.low %v1107_v30, %v1107_v30  ;;  %v2601_v43 = vcombine.high %v1107_v30, %v1107_v30  ;;  %v732_v45 = vld [vmem:[#allocation2 + $0x10] sm:$0xff]  ;;  %v730_v51 = vld [vmem:[#allocation2] sm:$0xff]  ;;  %v733_v56 = vld [vmem:[#allocation2 + $0x18] sm:$0xff]  ;;  %s3641_s23 = smov 32   ;;  %s3642_s16 = smov 56  }
 0x174   : > { %v967_v26 = vshrl.u32 %v2580_v24, 16  ;;  %v970_v27 = vshll.u32 %v2580_v24, 16  ;;  %v4103_v48 = vshll.u32 %v2581_v34, 16  ;;  %v4113_v59 = vld [vmem:[#allocation5 + $0x48] sm:$0x1e]  ;;  %vm4134_vm9 = vmand %vm851_vm1, %vm852_vm2  ;;  %vm910_vm2 = vcmask 64512  }
 0x175   : > { %v1755_v28 = vshrl.u32 %v2698_v25, 16  ;;  %v1758_v29 = vshll.u32 %v2698_v25, 16  ;;  %v4107_v54 = vshll.u32 %v2699_v37, 16  ;;  %v4111_v58 = vrot.slane %v2600_v40, 9  ;;  %v731_v62 = vld [vmem:[#allocation2 + $0x8] sm:$0xff]  ;;  %vm4160_vm15 = vmor %vm1155_vm7, %vm1156_vm8  ;;  %s4581_s24 = sld [smem:[#allocation33_spill]] }
 0x176   : > { %2807 = vmatpush3.bf16.msra.mxu0 %v3078_v4  ;;  %v969_v31 = vrot.slane %v967_v26, 4  ;;  %v972_v32 = vrot.slane %v970_v27, 5  ;;  %v4116_v63 = vrot.slane %v2601_v43, 5  ;;  %v978_v3 = vrot.slane %v4103_v48, 5  ;;  %vm4174_vm1 = vmor %vm963_vm10, %vm964_vm11  ;;  %s4582_s4 = sld [smem:[#allocation32_spill]]  ;;  %p4585_p7 = scmp.ne.s32.totalorder %s4566_s12, 0 }
 0x177   : > { %2808 = vmatprep.subr.bf16.mxu0 %v3079_v5  ;;  %v1757_v35 = vrot.slane %v1755_v28, 4  ;;  %v1760_v36 = vrot.slane %v1758_v29, 5  ;;  %v1766_v6 = vrot.slane %v4107_v54, 5  ;;  %v2718_v7 = vcombine.low %v4113_v59, %v4113_v59 }
 0x178   : > { %v973_v44 = vor.u32 %v972_v32, %v969_v31  ;;  %vm1557_vm7 = vcmask 392512   ;;  %vm1603_vm8 = vcmask 458112   ;;  %vm1901_vm10 = vcmask 589312  }
 0x179   : > { %v1761_v49 = vor.u32 %v1760_v36, %v1757_v35  ;;  %v860_v36 = vld [vmem:[#allocation5 + $0x18] sm:$0x1f] }
 0x17a   : > { %2809 = vmatpush3.bf16.msra.mxu0 %v3079_v5  ;;  %v4118_v0 = vrot.slane %v973_v44, 4  ;;  %v854_v44 = vld [vmem:[#allocation5 + $0x8] sm:$0x1f] }
 0x17b   : > { %2810 = vmatprep.subr.bf16.mxu0 %v3080_v9  ;;  %v4122_v4 = vrot.slane %v1761_v49, 4  ;;  %s2761_s30 = sshll.u32 %s4581_s24, 3 }
 0x17e   : > { %2811 = vmatpush3.bf16.msra.mxu0 %v3080_v9 }
 0x17f   : > { %2812 = vmatprep.subr.bf16.mxu0 %v3081_v10 }
 0x182   : > { %2813 = vmatpush3.bf16.msra.mxu0 %v3081_v10 }
 0x183   : > { %2814 = vmatprep.subr.bf16.mxu0 %v3082_v11 }
 0x186   : > { %2815 = vmatpush3.bf16.msra.mxu0 %v3082_v11 }
 0x187   : > { %2816 = vmatprep.subr.bf16.mxu0 %v3083_v12 }
 0x18a   : > { %2817 = vmatpush3.bf16.msra.mxu0 %v3083_v12 }
 0x18d   : > { %2819 = vmatmul.mubr.bf16.vlgmr.msra.gmra.mrb[0].mxu0 %v568_v17 }
 0x18e   : > { %2822 = vmatprep.mubr.bf16.mxu0 %v569_v18 }
 0x195   : > { %2823 = vmatmul.mubr.bf16.gmra.mrb[4].mxu0 %v570_v21 }
 0x260   : > { %v2820_v38 = vpop.f32.mrb[0].mxu0 }
 0x261   : > { %v709_v41 = vmul.f32 %v2820_v38, %v4097_v33  ;;  %v669_v42 = vpop.f32.mrb[1].mxu0 }
 0x262   : > { %v707_v46 = vmul.f32 %v4097_v33, %v669_v42  ;;  %v2821_v47 = vpop.f32.mrb[2].mxu0 }
 0x263   : > { %v724_v50 = vadd.f32 %v4099_v39, %v709_v41  ;;  %v710_v52 = vmul.f32 %v2821_v47, %v4097_v33  ;;  %v672_v53 = vpop.f32.mrb[3].mxu0  ;;  %v736_v41 = vld [vmem:[#allocation2 + $0x30] sm:$0xff]  ;;  %v734_v47 = vld [vmem:[#allocation2 + $0x20] sm:$0xff] }
 0x264   : > { %v722_v55 = vadd.f32 %v4099_v39, %v707_v46  ;;  %v708_v57 = vmul.f32 %v4097_v33, %v672_v53 }
 0x265   : > { %v740_v60 = vadd.f32 %v732_v45, %v724_v50  ;;  %v725_v61 = vadd.f32 %v4099_v39, %v710_v52 }
 0x266   : > { %v738_v1 = vadd.f32 %v730_v51, %v722_v55  ;;  %v723_v2 = vadd.f32 %v4099_v39, %v708_v57  ;;  %v863_v51 = vld [vmem:[#allocation5 + $0x20] sm:$0x1f]  ;;  %v737_v55 = vld [vmem:[#allocation2 + $0x38] sm:$0xff] }
 0x267   : > { %vm748_vm3 = vcmp.ge.f32.partialorder %v740_v60, 1.0  ;;  %v741_v5 = vadd.f32 %v733_v56, %v725_v61  ;;  %v857_v61 = vld [vmem:[#allocation5 + $0x10] sm:$0x1f] }
 0x268   : > { %v756_v9 = vsel %vm748_vm3, 1.0, %v3634_v8  ;;  %v764_v10 = vsel %vm748_vm3, 0.0, %v740_v60  ;;  %vm746_vm4 = vcmp.ge.f32.partialorder %v738_v1, 1.0  ;;  %v739_v11 = vadd.f32 %v731_v62, %v723_v2  ;;  %v2824_v12 = vpop.f32.mrb[4].mxu0 }
 0x269   : > { %772 = vst [vmem:[#allocation2 + $0x10] sm:$0xff] %v764_v10  ;;  %v780_v13 = vpack.c.bf16 %v756_v9, %v756_v9  ;;  %v754_v14 = vsel %vm746_vm4, 1.0, %v3634_v8  ;;  %v762_v15 = vsel %vm746_vm4, 0.0, %v738_v1  ;;  %vm749_vm5 = vcmp.ge.f32.partialorder %v741_v5, 1.0  ;;  %v685_v16 = vpop.f32.mrb[5].mxu0 }
 0x26a   : > { %770 = vst [vmem:[#allocation2] sm:$0xff] %v762_v15  ;;  %v778_v17 = vpack.c.bf16 %v754_v14, %v754_v14  ;;  %v757_v18 = vsel %vm749_vm5, 1.0, %v3634_v8  ;;  %v765_v19 = vsel %vm749_vm5, 0.0, %v741_v5  ;;  %vm747_vm6 = vcmp.ge.f32.partialorder %v739_v11, 1.0  ;;  %v2825_v20 = vpop.f32.mrb[6].mxu0 }
 0x26b   : > { %v801_v21 = vshrl.u32 %v780_v13, 16  ;;  %v804_v22 = vshll.u32 %v780_v13, 16  ;;  %773 = vst [vmem:[#allocation2 + $0x18] sm:$0xff] %v765_v19  ;;  %v781_v23 = vpack.c.bf16 %v757_v18, %v757_v18  ;;  %v755_v24 = vsel %vm747_vm6, 1.0, %v3634_v8  ;;  %v688_v25 = vpop.f32.mrb[7].mxu0 }
 0x26c   : > { %v787_v26 = vshrl.u32 %v778_v17, 16  ;;  %v790_v27 = vshll.u32 %v778_v17, 16  ;;  %v763_v28 = vsel %vm747_vm6, 0.0, %v739_v11  ;;  %v779_v29 = vpack.c.bf16 %v755_v24, %v755_v24 }
 0x26d   : > { %v803_v30 = vrot.slane %v801_v21, 7  ;;  %v808_v31 = vshrl.u32 %v781_v23, 16  ;;  %v811_v32 = vshll.u32 %v781_v23, 16  ;;  %771 = vst [vmem:[#allocation2 + $0x8] sm:$0xff] %v763_v28  ;;  %v713_v34 = vmul.f32 %v2824_v12, %v4097_v33  ;;  %v735_v12 = vld [vmem:[#allocation2 + $0x28] sm:$0xff] }
 0x26e   : > { %v789_v37 = vrot.slane %v787_v26, 7  ;;  %v794_v38 = vshrl.u32 %v779_v29, 16  ;;  %v797_v40 = vshll.u32 %v779_v29, 16  ;;  %v711_v42 = vmul.f32 %v4097_v33, %v685_v16  ;;  %v872_v28 = vld [vmem:[#allocation5 + $0x38] sm:$0x1f]  ;;  %v4347_v26 = vld [vmem:[#allocation19 + $0x10] sm:$0xff]  }
 0x26f   : > { %v806_v43 = vor.u32 %v804_v22, %v803_v30  ;;  %v810_v45 = vrot.slane %v808_v31, 7  ;;  %v728_v46 = vadd.f32 %v4099_v39, %v713_v34  ;;  %v714_v49 = vmul.f32 %v2825_v20, %v4097_v33  ;;  %v866_v34 = vld [vmem:[#allocation5 + $0x28] sm:$0x1f] }
 0x270   : > { %v792_v50 = vor.u32 %v790_v27, %v789_v37  ;;  %v796_v52 = vrot.slane %v794_v38, 7  ;;  %v726_v53 = vadd.f32 %v4099_v39, %v711_v42  ;;  %v712_v56 = vmul.f32 %v4097_v33, %v688_v25 }
 0x271   : > { %v861_v57 = vsel %vm4134_vm9, %v806_v43, %v860_v36  ;;  %v813_v60 = vor.u32 %v811_v32, %v810_v45  ;;  %v744_v62 = vadd.f32 %v736_v41, %v728_v46  ;;  %v729_v1 = vadd.f32 %v4099_v39, %v714_v49 }
 0x272   : > { %862 = vst [vmem:[#allocation5 + $0x18] sm:$0x1f] %v861_v57  ;;  %v855_v2 = vsel %vm4134_vm9, %v792_v50, %v854_v44  ;;  %v799_v5 = vor.u32 %v797_v40, %v796_v52  ;;  %v742_v9 = vadd.f32 %v734_v47, %v726_v53  ;;  %v727_v10 = vadd.f32 %v4099_v39, %v712_v56  ;;  %v869_v57 = vld [vmem:[#allocation5 + $0x30] sm:$0x1f]  ;;  %v4339_v40 = vld [vmem:[#allocation19 + $0x8] sm:$0xff]  }
 0x273   : > { %856 = vst [vmem:[#allocation5 + $0x8] sm:$0x1f] %v855_v2  ;;  %v864_v33 = vsel %vm4134_vm9, %v813_v60, %v863_v51  ;;  %vm752_vm12 = vcmp.ge.f32.partialorder %v744_v62, 1.0  ;;  %v745_v11 = vadd.f32 %v737_v55, %v729_v1  ;;  %v2719_v13 = vcombine.high %v4113_v59, %v4113_v59 }
 0x274   : > { %865 = vst [vmem:[#allocation5 + $0x20] sm:$0x1f] %v864_v33  ;;  %v858_v14 = vsel %vm4134_vm9, %v799_v5, %v857_v61  ;;  %v760_v15 = vsel %vm752_vm12, 1.0, %v3634_v8  ;;  %v768_v16 = vsel %vm752_vm12, 0.0, %v744_v62  ;;  %vm750_vm13 = vcmp.ge.f32.partialorder %v742_v9, 1.0 }
 0x275   : > { %859 = vst [vmem:[#allocation5 + $0x10] sm:$0x1f] %v858_v14  ;;  %776 = vst [vmem:[#allocation2 + $0x30] sm:$0xff] %v768_v16  ;;  %v784_v39 = vpack.c.bf16 %v760_v15, %v760_v15  ;;  %v758_v17 = vsel %vm750_vm13, 1.0, %v3634_v8  ;;  %v766_v18 = vsel %vm750_vm13, 0.0, %v742_v9  ;;  %vm753_vm14 = vcmp.ge.f32.partialorder %v745_v11, 1.0 }
 0x276   : > { %774 = vst [vmem:[#allocation2 + $0x20] sm:$0xff] %v766_v18  ;;  %v782_v19 = vpack.c.bf16 %v758_v17, %v758_v17  ;;  %v761_v20 = vsel %vm753_vm14, 1.0, %v3634_v8  ;;  %v769_v21 = vsel %vm753_vm14, 0.0, %v745_v11  ;;  %v743_v22 = vadd.f32 %v735_v12, %v727_v10 }
 0x277   : > { %v829_v23 = vshrl.u32 %v784_v39, 16  ;;  %v832_v24 = vshll.u32 %v784_v39, 16  ;;  %777 = vst [vmem:[#allocation2 + $0x38] sm:$0xff] %v769_v21  ;;  %v785_v25 = vpack.c.bf16 %v761_v20, %v761_v20  ;;  %v4167_v27 = vrot.slane %v2718_v7, 9  ;;  %v875_v7 = vld [vmem:[#allocation5 + $0x40] sm:$0x1f] }
 0x278   : > { %v815_v29 = vshrl.u32 %v782_v19, 16  ;;  %v818_v30 = vshll.u32 %v782_v19, 16  ;;  %vm751_vm0 = vcmp.ge.f32.partialorder %v743_v22, 1.0  ;;  %v4169_v31 = vrot.slane %v2719_v13, 5 }
 0x279   : > { %v831_v32 = vrot.slane %v829_v23, 7  ;;  %v836_v36 = vshrl.u32 %v785_v25, 16  ;;  %v839_v37 = vshll.u32 %v785_v25, 16  ;;  %v759_v38 = vsel %vm751_vm0, 1.0, %v3634_v8  ;;  %v1455_v1 = vld [vmem:[#allocation5 + $0x18] sm:$0x1e] }
 0x27a   : > { %v817_v59 = vrot.slane %v815_v29, 7  ;;  %v767_v41 = vsel %vm751_vm0, 0.0, %v743_v22  ;;  %v783_v42 = vpack.c.bf16 %v759_v38, %v759_v38  ;;  %v1108_v43 = vld [vmem:[#allocation5 + $0x8] sm:$0x1e]  ;;  %v1161_v44 = vsel %vm4160_vm15, %v4111_v58, %v4116_v63  ;;  %v1110_v23 = vld [vmem:[#allocation5 + $0x18] sm:$0x1e] }
 0x27b   : > { %v834_v45 = vor.u32 %v832_v24, %v831_v32  ;;  %v838_v46 = vrot.slane %v836_v36, 7  ;;  %775 = vst [vmem:[#allocation2 + $0x28] sm:$0xff] %v767_v41  ;;  %v3084_v47 = vld [vmem:[#allocation5 + $0x18] ss:$8 sps:$4 sm:$0xff]   ;;  %v2602_v49 = vcombine.low %v1108_v43, %v1108_v43  ;;  %v2603_v50 = vcombine.high %v1108_v43, %v1108_v43  ;;  %v1453_v33 = vld [vmem:[#allocation5 + $0x8] sm:$0x1e] }
 0x27c   : > { %v820_v51 = vor.u32 %v818_v30, %v817_v59  ;;  %v822_v52 = vshrl.u32 %v783_v42, 16  ;;  %v825_v53 = vshll.u32 %v783_v42, 16  ;;  %v3085_v55 = vld [vmem:[#allocation5 + $0x8] ss:$8 sps:$4 sm:$0xff]   ;;  %v4187_v56 = vsel %vm4174_vm1, %v4118_v0, %v978_v3  ;;  %1249 = vrot.lane.b32.xlu1 %v3084_v47, %s3635_s10  ;;  %v1456_v9 = vld [vmem:[#allocation5 + $0x20] sm:$0x1e] }
 0x27d   : > { %v873_v58 = vsel %vm4134_vm9, %v834_v45, %v872_v28  ;;  %v841_v63 = vor.u32 %v839_v37, %v838_v46  ;;  %v2617_v60 = vrot.slane %v2602_v49, 9  ;;  %v1164_v61 = vrot.slane %v2603_v50, 5  ;;  %1247 = vrot.lane.b32.xlu0 %v3085_v55, %s3635_s10  ;;  %v1454_v11 = vld [vmem:[#allocation5 + $0x10] sm:$0x1e]  ;;  %v1798_v37 = vld [vmem:[#allocation5 + $0x18] sm:$0x1e] }
 0x27e   : > { %874 = vst [vmem:[#allocation5 + $0x38] sm:$0x1f] %v873_v58  ;;  %v867_v62 = vsel %vm4134_vm9, %v820_v51, %v866_v34  ;;  %v824_v48 = vrot.slane %v822_v52, 7  ;;  %v4200_v0 = vsel %vm4174_vm1, %v4122_v4, %v1766_v6  ;;  %v1876_v3 = vsel %vm4160_vm15, %v4167_v27, %v4169_v31  ;;  %v3090_v12 = vld [vmem:[#allocation5 + $0x10] ss:$8 sps:$4 sm:$0xff]  }
 0x27f   : > { %868 = vst [vmem:[#allocation5 + $0x28] sm:$0x1f] %v867_v62  ;;  %v876_v2 = vsel %vm4134_vm9, %v841_v63, %v875_v7  ;;  %v1165_v5 = vsel %vm4160_vm15, %v2617_v60, %v1164_v61  ;;  %v2656_v10 = vcombine.low %v1455_v1, %v1455_v1  ;;  %v2657_v54 = vcombine.high %v1455_v1, %v1455_v1  ;;  %v1109_v18 = vld [vmem:[#allocation5 + $0x10] sm:$0x1e]  ;;  %v916_v38 = vld [vmem:[#allocation5 + $0x8] sm:$0x1f] }
 0x280   : > { %877 = vst [vmem:[#allocation5 + $0x40] sm:$0x1f] %v876_v2  ;;  %v827_v4 = vor.u32 %v825_v53, %v824_v48  ;;  %v2624_v6 = vcombine.low %v1161_v44, %v1165_v5  ;;  %v2658_v13 = vcombine.low %v1456_v9, %v1456_v9  ;;  %v2659_v14 = vcombine.high %v1456_v9, %v1456_v9  ;;  %v1797_v30 = vld [vmem:[#allocation5 + $0x10] sm:$0x1e]  ;;  %v1266_v49 = vld [vmem:[#allocation5 + $0x18] sm:$0x1f] }
 0x281   : > { %v2670_v15 = vrot.slane %v2656_v10, 9  ;;  %v1511_v16 = vrot.slane %v2657_v54, 5  ;;  %v2652_v39 = vcombine.low %v1453_v33, %v1453_v33  ;;  %v2653_v17 = vcombine.high %v1453_v33, %v1453_v33  ;;  %1591 = vrot.lane.b32.xlu0 %v3090_v12, %s3637_s21  ;;  %v3188_v43 = vld [vmem:[#allocation15] sm:$0xff]   ;;  %v1267_v1 = vld [vmem:[#allocation5 + $0x20] sm:$0x1f] }
 0x282   : > { %v870_v19 = vsel %vm4134_vm9, %v827_v4, %v869_v57  ;;  %1202 = vrot.lane.b32.xlu1 %v2624_v6, %s3636_s25  ;;  %v2671_v20 = vrot.slane %v2658_v13, 9  ;;  %v1515_v21 = vrot.slane %v2659_v14, 5  ;;  %v2654_v22 = vcombine.low %v1454_v11, %v1454_v11  ;;  %2826 = vmatprep.subr.bf16.mxu1 %v3188_v43  ;;  %v3189_v2 = vld [vmem:[#allocation15 + $0x8] sm:$0xff]   ;;  %v4351_v27 = vld [vmem:[#allocation19 + $0x18] sm:$0xff]  }
 0x283   : > { %871 = vst [vmem:[#allocation5 + $0x30] sm:$0x1f] %v870_v19  ;;  %v1512_v24 = vsel %vm4160_vm15, %v2670_v15, %v1511_v16  ;;  %v2655_v25 = vcombine.high %v1454_v11, %v1454_v11  ;;  %v2668_v28 = vrot.slane %v2652_v39, 9  ;;  %v1503_v29 = vrot.slane %v2653_v17, 5  ;;  %2827 = vmatpush3.bf16.msra.mxu1 %v3188_v43  ;;  %v917_v19 = vld [vmem:[#allocation5 + $0x10] sm:$0x1f] }
 0x284   : > { %v1516_v35 = vsel %vm4160_vm15, %v2671_v20, %v1515_v21  ;;  %v2669_v32 = vrot.slane %v2654_v22, 9  ;;  %v2604_v34 = vcombine.low %v1109_v18, %v1109_v18  ;;  %v2605_v36 = vcombine.high %v1109_v18, %v1109_v18  ;;  %2828 = vmatprep.subr.bf16.mxu1 %v3189_v2  ;;  %v4355_v31 = vld [vmem:[#allocation19 + $0x20] sm:$0xff]  }
 0x285   : > { %v2677_v59 = vcombine.low %v1512_v24, %v1516_v35  ;;  %v1504_v7 = vsel %vm4160_vm15, %v2668_v28, %v1503_v29  ;;  %v1507_v41 = vrot.slane %v2655_v25, 5  ;;  %v2606_v42 = vcombine.low %v1110_v23, %v1110_v23  ;;  %v918_v24 = vld [vmem:[#allocation5 + $0x18] sm:$0x1f] }
 0x286   : > { %v2607_v44 = vcombine.high %v1110_v23, %v1110_v23  ;;  %v2618_v45 = vrot.slane %v2604_v34, 9  ;;  %v1168_v46 = vrot.slane %v2605_v36, 5  ;;  %v2704_v47 = vcombine.low %v1797_v30, %v1797_v30  ;;  %v3107_v25 = vld [vmem:[#allocation5 + $0x20] ss:$8 sps:$4 sm:$0xff]  }
 0x287   : > { %1547 = vrot.lane.b32.xlu1 %v2677_v59, %s3638_s2  ;;  %v1508_v50 = vsel %vm4160_vm15, %v2669_v32, %v1507_v41  ;;  %v2619_v51 = vrot.slane %v2606_v42, 9  ;;  %v2705_v52 = vcombine.high %v1797_v30, %v1797_v30  ;;  %v2706_v53 = vcombine.low %v1798_v37, %v1798_v37  ;;  %2829 = vmatpush3.bf16.msra.mxu1 %v3189_v2  ;;  %v3191_v32 = vld [vmem:[#allocation15 + $0x10] sm:$0xff]  }
 0x288   : > { %v2676_v55 = vcombine.low %v1504_v7, %v1508_v50  ;;  %v1169_v58 = vsel %vm4160_vm15, %v2618_v45, %v1168_v46  ;;  %v1172_v63 = vrot.slane %v2607_v44, 5  ;;  %v2707_v57 = vcombine.high %v1798_v37, %v1798_v37  ;;  %2830 = vmatprep.subr.bf16.mxu1 %v3191_v32 }
 0x289   : > { %v2720_v60 = vrot.slane %v2704_v47, 9  ;;  %v1847_v61 = vrot.slane %v2705_v52, 5  ;;  %v2721_v62 = vrot.slane %v2706_v53, 9  ;;  %v2582_v48 = vcombine.low %v916_v38, %v916_v38 }
 0x28a   : > { %1545 = vrot.lane.b32.xlu0 %v2676_v55, %s3638_s2  ;;  %v1173_v5 = vsel %vm4160_vm15, %v2619_v51, %v1172_v63  ;;  %v1851_v9 = vrot.slane %v2707_v57, 5  ;;  %v2583_v10 = vcombine.high %v916_v38, %v916_v38  ;;  %v2636_v54 = vcombine.low %v1266_v49, %v1266_v49  ;;  %v3108_v59 = vld [vmem:[#allocation5 + $0x28] ss:$8 sps:$4 sm:$0xff]  }
 0x28b   : > { %v2625_v33 = vcombine.low %v1169_v58, %v1173_v5  ;;  %v1848_v11 = vsel %vm4160_vm15, %v2720_v60, %v1847_v61  ;;  %v981_v4 = vshrl.u32 %v2582_v48, 16  ;;  %v984_v6 = vshll.u32 %v2582_v48, 16  ;;  %2831 = vmatpush3.bf16.msra.mxu1 %v3191_v32  ;;  %v3110_v50 = vld [vmem:[#allocation5 + $0x30] ss:$8 sps:$4 sm:$0xff]   ;;  %v1460_v5 = vld [vmem:[#allocation5 + $0x40] sm:$0x1e] }
 0x28c   : > { %v1852_v12 = vsel %vm4160_vm15, %v2721_v62, %v1851_v9  ;;  %v990_v13 = vshll.u32 %v2583_v10, 16  ;;  %v2637_v14 = vcombine.high %v1266_v49, %v1266_v49  ;;  %v2638_v15 = vcombine.low %v1267_v1, %v1267_v1  ;;  %v3109_v49 = vld [vmem:[#allocation5 + $0x38] ss:$8 sps:$4 sm:$0xff]  }
 0x28d   : > { %1204 = vrot.lane.b32.xlu1 %v2625_v33, %s3636_s25  ;;  %v2728_v16 = vcombine.low %v1848_v11, %v1852_v12  ;;  %v983_v39 = vrot.slane %v981_v4, 4  ;;  %v986_v17 = vrot.slane %v984_v6, 5  ;;  %v2639_v18 = vcombine.high %v1267_v1, %v1267_v1  ;;  %v1459_v61 = vld [vmem:[#allocation5 + $0x38] sm:$0x1e]  ;;  %v3193_v11 = vld [vmem:[#allocation15 + $0x18] sm:$0xff]  }
 0x28e   : > { %v992_v20 = vrot.slane %v990_v13, 5  ;;  %v1341_v21 = vshrl.u32 %v2636_v54, 16  ;;  %v1344_v22 = vshll.u32 %v2636_v54, 16  ;;  %v1350_v23 = vshll.u32 %v2637_v14, 16  ;;  %v1264_v14 = vld [vmem:[#allocation5 + $0x8] sm:$0x1f]  ;;  %2832 = vmatprep.subr.bf16.mxu1 %v3193_v11 }
 0x28f   : > { %1889 = vrot.lane.b32.xlu0 %v2728_v16, %s3639_s17  ;;  %v987_v28 = vor.u32 %v986_v17, %v983_v39  ;;  %v1355_v29 = vshrl.u32 %v2638_v15, 16  ;;  %v1358_v30 = vshll.u32 %v2638_v15, 16  ;;  %v1364_v35 = vshll.u32 %v2639_v18, 16  ;;  %v1265_v18 = vld [vmem:[#allocation5 + $0x10] sm:$0x1f]  ;;  %2833 = vmatpush3.bf16.msra.mxu1 %v3193_v11 }
 0x290   : > { %v1343_v34 = vrot.slane %v1341_v21, 4  ;;  %v1346_v36 = vrot.slane %v1344_v22, 5  ;;  %v1352_v37 = vrot.slane %v1350_v23, 5  ;;  %v2584_v38 = vcombine.low %v917_v19, %v917_v19 }
 0x291   : > { %1593 = vrot.lane.b32.xlu1 %v3107_v25, %s3637_s21  ;;  %v988_v7 = vrot.slane %v987_v28, 4  ;;  %v1357_v41 = vrot.slane %v1355_v29, 4  ;;  %v1360_v42 = vrot.slane %v1358_v30, 5  ;;  %v1366_v43 = vrot.slane %v1364_v35, 5 }
 0x292   : > { %v1347_v44 = vor.u32 %v1346_v36, %v1343_v34  ;;  %v2585_v45 = vcombine.high %v917_v19, %v917_v19  ;;  %v2586_v46 = vcombine.low %v918_v24, %v918_v24  ;;  %v2587_v47 = vcombine.high %v918_v24, %v918_v24 }
 0x293   : > { %1251 = vrot.lane.b32.xlu0 %v3108_v59, %s3635_s10  ;;  %v993_v51 = vsel %vm4174_vm1, %v988_v7, %v992_v20  ;;  %v1361_v52 = vor.u32 %v1360_v42, %v1357_v41  ;;  %v995_v53 = vshrl.u32 %v2584_v38, 16  ;;  %v998_v55 = vshll.u32 %v2584_v38, 16  ;;  %v1113_v59 = vld [vmem:[#allocation5 + $0x30] sm:$0x1e]  ;;  %v1114_v7 = vld [vmem:[#allocation5 + $0x38] sm:$0x1e] }
 0x294   : > { %v2596_v58 = vcombine.low %v4187_v56, %v993_v51  ;;  %v1348_v63 = vrot.slane %v1347_v44, 4  ;;  %v1004_v57 = vshll.u32 %v2585_v45, 16  ;;  %v1009_v60 = vshrl.u32 %v2586_v46, 16  ;;  %v3111_v56 = vld [vmem:[#allocation5 + $0x40] ss:$8 sps:$4 sm:$0xff]  }
 0x295   : > { %1253 = vrot.lane.b32.xlu1 %v3109_v49, %s3635_s10  ;;  %v1362_v62 = vrot.slane %v1361_v52, 4  ;;  %v997_v48 = vrot.slane %v995_v53, 4  ;;  %v1000_v1 = vrot.slane %v998_v55, 5  ;;  %v1012_v2 = vshll.u32 %v2586_v46, 16  ;;  %v1608_v45 = vld [vmem:[#allocation5 + $0x10] sm:$0x1f] }
 0x296   : > { %v1353_v9 = vsel %vm4174_vm1, %v1348_v63, %v1352_v37  ;;  %v1006_v10 = vrot.slane %v1004_v57, 5  ;;  %v1011_v54 = vrot.slane %v1009_v60, 4  ;;  %v1018_v33 = vshll.u32 %v2587_v47, 16  ;;  %v1609_v51 = vld [vmem:[#allocation5 + $0x18] sm:$0x1f]  ;;  %s2762_s10 = sshll.u32 %s4582_s4, 4 }
 0x297   : > { %1595 = vrot.lane.b32.xlu0 %v3110_v50, %s3637_s21  ;;  %v1367_v4 = vsel %vm4174_vm1, %v1362_v62, %v1366_v43  ;;  %v1001_v6 = vor.u32 %v1000_v1, %v997_v48  ;;  %v1014_v12 = vrot.slane %v1012_v2, 5  ;;  %v2664_v13 = vcombine.low %v1459_v61, %v1459_v61  ;;  %v3190_v52 = vld [vmem:[#allocation5] ss:$8 sps:$4 sm:$0xff]   ;;  %v3192_v48 = vld [vmem:[#allocation5 + $0x10] ss:$8 sps:$4 sm:$0xff]  }
 0x298   : > { %v2649_v15 = vcombine.low %v1353_v9, %v1367_v4  ;;  %v1020_v16 = vrot.slane %v1018_v33, 5  ;;  %v2665_v39 = vcombine.high %v1459_v61, %v1459_v61  ;;  %v2666_v17 = vcombine.low %v1460_v5, %v1460_v5  ;;  %911 = vst.msk [vmem:[#allocation6] sm:$0xff] %vm910_vm2, %v3190_v52  ;;  %v3194_v1 = vld [vmem:[#allocation15 + $0x20] sm:$0xff]   ;;  %912 = vst.msk [vmem:[#allocation6 + $0x8] sm:$0xff] %vm910_vm2, %v3192_v48  ;;  %v1800_v48 = vld [vmem:[#allocation5 + $0x28] sm:$0x1e] }
 0x299   : > { %1597 = vrot.lane.b32.xlu1 %v3111_v56, %s3637_s21  ;;  %v1002_v19 = vrot.slane %v1001_v6, 4  ;;  %v1015_v20 = vor.u32 %v1014_v12, %v1011_v54  ;;  %v2667_v21 = vcombine.high %v1460_v5, %v1460_v5  ;;  %v2674_v22 = vrot.slane %v2664_v13, 9  ;;  %v3197_v54 = vld [vmem:[#allocation5 + $0x20] ss:$8 sps:$4 sm:$0xff]   ;;  %2834 = vmatprep.subr.bf16.mxu1 %v3194_v1  ;;  %s2360_s21 = sshll.u32 %s4076_s1, 4  ;;  %s4450_s21 = int_to_ptr.vmem [resolvable:$true] %s2360_s21 }
 0x29a   : > { %v1527_v23 = vrot.slane %v2665_v39, 5  ;;  %v2675_v24 = vrot.slane %v2666_v17, 9  ;;  %v2632_v25 = vcombine.low %v1264_v14, %v1264_v14  ;;  %v2633_v28 = vcombine.high %v1264_v14, %v1264_v14  ;;  %2835 = vmatpush3.bf16.msra.mxu1 %v3194_v1  ;;  %913 = vst.msk [vmem:[#allocation6 + $0x10] sm:$0xff] %vm910_vm2, %v3197_v54 }
 0x29b   : > { %1090 = vrot.lane.b32.xlu0 %v2596_v58, %s4538_s0  ;;  %v1007_v29 = vsel %vm4174_vm1, %v1002_v19, %v1006_v10  ;;  %v1016_v30 = vrot.slane %v1015_v20, 4  ;;  %v1531_v35 = vrot.slane %v2667_v21, 5  ;;  %v2634_v32 = vcombine.low %v1265_v18, %v1265_v18 }
 0x29c   : > { %v1528_v34 = vsel %vm4160_vm15, %v2674_v22, %v1527_v23  ;;  %v2635_v36 = vcombine.high %v1265_v18, %v1265_v18  ;;  %v1313_v37 = vshrl.u32 %v2632_v25, 16  ;;  %v1316_v38 = vshll.u32 %v2632_v25, 16  ;;  %v1610_v23 = vld [vmem:[#allocation5 + $0x20] sm:$0x1f] }
 0x29d   : > { %1438 = vrot.lane.b32.xlu1 %v2649_v15, %s3641_s23  ;;  %v1021_v41 = vsel %vm4174_vm1, %v1016_v30, %v1020_v16  ;;  %v1532_v42 = vsel %vm4160_vm15, %v2675_v24, %v1531_v35  ;;  %v1322_v43 = vshll.u32 %v2633_v28, 16  ;;  %v1327_v44 = vshrl.u32 %v2634_v32, 16  ;;  %v3199_v15 = vld [vmem:[#allocation5 + $0x30] ss:$8 sps:$4 sm:$0xff]   ;;  %v3195_v24 = vld [vmem:[#allocation15 + $0x28] sm:$0xff]  }
 0x29e   : > { %v2597_v46 = vcombine.low %v1007_v29, %v1021_v41  ;;  %v2679_v47 = vcombine.low %v1528_v34, %v1532_v42  ;;  %v1315_v49 = vrot.slane %v1313_v37, 4  ;;  %v1318_v50 = vrot.slane %v1316_v38, 5  ;;  %914 = vst.msk [vmem:[#allocation6 + $0x18] sm:$0xff] %vm910_vm2, %v3199_v15  ;;  %v1611_v35 = vld [vmem:[#allocation5 + $0x28] sm:$0x1f]  ;;  %2836 = vmatprep.subr.bf16.mxu1 %v3195_v24 }
 0x29f   : > { %v1324_v53 = vrot.slane %v1322_v43, 5  ;;  %v1329_v55 = vrot.slane %v1327_v44, 4  ;;  %v1330_v58 = vshll.u32 %v2634_v32, 16  ;;  %v1336_v63 = vshll.u32 %v2635_v36, 16  ;;  %2837 = vmatpush3.bf16.msra.mxu1 %v3195_v24 }
 0x2a0   : > { %1092 = vrot.lane.b32.xlu0 %v2597_v46, %s4538_s0  ;;  %v1319_v57 = vor.u32 %v1318_v50, %v1315_v49  ;;  %v2612_v60 = vcombine.low %v1113_v59, %v1113_v59  ;;  %v2613_v61 = vcombine.high %v1113_v59, %v1113_v59  ;;  %v2614_v62 = vcombine.low %v1114_v7, %v1114_v7 }
 0x2a1   : > { %1551 = vrot.lane.b32.xlu1 %v2679_v47, %s3638_s2  ;;  %v1332_v2 = vrot.slane %v1330_v58, 5  ;;  %v1338_v5 = vrot.slane %v1336_v63, 5  ;;  %v2615_v9 = vcombine.high %v1114_v7, %v1114_v7  ;;  %v2684_v10 = vcombine.low %v1608_v45, %v1608_v45  ;;  %v1799_v63 = vld [vmem:[#allocation5 + $0x20] sm:$0x1e] }
 0x2a2   : > { %v1320_v33 = vrot.slane %v1319_v57, 4  ;;  %v2622_v11 = vrot.slane %v2612_v60, 9  ;;  %v1184_v56 = vrot.slane %v2613_v61, 5  ;;  %v2623_v4 = vrot.slane %v2614_v62, 9 }
 0x2a3   : > { %v1333_v6 = vor.u32 %v1332_v2, %v1329_v55  ;;  %v1188_v12 = vrot.slane %v2615_v9, 5  ;;  %v2685_v13 = vcombine.high %v1608_v45, %v1608_v45  ;;  %v2686_v14 = vcombine.low %v1609_v51, %v1609_v51 }
 0x2a4   : > { %v1325_v16 = vsel %vm4174_vm1, %v1320_v33, %v1324_v53  ;;  %v1185_v39 = vsel %vm4160_vm15, %v2622_v11, %v1184_v56  ;;  %v2687_v17 = vcombine.high %v1609_v51, %v1609_v51  ;;  %v1657_v18 = vshrl.u32 %v2684_v10, 16  ;;  %v3196_v51 = vld [vmem:[#allocation15 + $0x30] sm:$0xff]  }
 0x2a5   : > { %v1334_v19 = vrot.slane %v1333_v6, 4  ;;  %v1189_v20 = vsel %vm4160_vm15, %v2623_v4, %v1188_v12  ;;  %v1660_v21 = vshll.u32 %v2684_v10, 16  ;;  %v1666_v22 = vshll.u32 %v2685_v13, 16  ;;  %2838 = vmatprep.subr.bf16.mxu1 %v3196_v51  ;;  %v919_v10 = vld [vmem:[#allocation5 + $0x20] sm:$0x1f] }
 0x2a6   : > { %v2627_v25 = vcombine.low %v1185_v39, %v1189_v20  ;;  %v1659_v28 = vrot.slane %v1657_v18, 4  ;;  %v1671_v29 = vshrl.u32 %v2686_v14, 16  ;;  %v1674_v30 = vshll.u32 %v2686_v14, 16  ;;  %2839 = vmatpush3.bf16.msra.mxu1 %v3196_v51  ;;  %v920_v14 = vld [vmem:[#allocation5 + $0x28] sm:$0x1f] }
 0x2a7   : > { %v1339_v32 = vsel %vm4174_vm1, %v1334_v19, %v1338_v5  ;;  %v1662_v34 = vrot.slane %v1660_v21, 5  ;;  %v1668_v36 = vrot.slane %v1666_v22, 5  ;;  %v1680_v37 = vshll.u32 %v2687_v17, 16 }
 0x2a8   : > { %v2648_v38 = vcombine.low %v1325_v16, %v1339_v32  ;;  %1208 = vrot.lane.b32.xlu1 %v2627_v25, %s3636_s25  ;;  %v1673_v59 = vrot.slane %v1671_v29, 4  ;;  %v1676_v7 = vrot.slane %v1674_v30, 5  ;;  %v2688_v41 = vcombine.low %v1610_v23, %v1610_v23  ;;  %v1111_v32 = vld [vmem:[#allocation5 + $0x20] sm:$0x1e] }
 0x2a9   : > { %v1663_v42 = vor.u32 %v1662_v34, %v1659_v28  ;;  %v1682_v43 = vrot.slane %v1680_v37, 5  ;;  %v2689_v44 = vcombine.high %v1610_v23, %v1610_v23  ;;  %v2690_v45 = vcombine.low %v1611_v35, %v1611_v35 }
 0x2aa   : > { %1436 = vrot.lane.b32.xlu0 %v2648_v38, %s3641_s23  ;;  %v1677_v46 = vor.u32 %v1676_v7, %v1673_v59  ;;  %v2691_v47 = vcombine.high %v1611_v35, %v1611_v35  ;;  %v1685_v49 = vshrl.u32 %v2688_v41, 16  ;;  %v1688_v50 = vshll.u32 %v2688_v41, 16  ;;  %v1112_v59 = vld [vmem:[#allocation5 + $0x28] sm:$0x1e] }
 0x2ab   : > { %v1664_v52 = vrot.slane %v1663_v42, 4  ;;  %v1694_v53 = vshll.u32 %v2689_v44, 16  ;;  %v1699_v55 = vshrl.u32 %v2690_v45, 16  ;;  %v1702_v58 = vshll.u32 %v2690_v45, 16  ;;  %v1270_v44 = vld [vmem:[#allocation5 + $0x38] sm:$0x1f] }
 0x2ac   : > { %v1678_v57 = vrot.slane %v1677_v46, 4  ;;  %v1687_v60 = vrot.slane %v1685_v49, 4  ;;  %v1690_v61 = vrot.slane %v1688_v50, 5  ;;  %v1708_v62 = vshll.u32 %v2691_v47, 16  ;;  %v3198_v45 = vld [vmem:[#allocation15 + $0x38] sm:$0xff]  }
 0x2ad   : > { %v1669_v1 = vsel %vm4174_vm1, %v1664_v52, %v1668_v36  ;;  %v1696_v2 = vrot.slane %v1694_v53, 5  ;;  %v1701_v5 = vrot.slane %v1699_v55, 4  ;;  %v1704_v9 = vrot.slane %v1702_v58, 5  ;;  %v1271_v58 = vld [vmem:[#allocation5 + $0x40] sm:$0x1f]  ;;  %2840 = vmatprep.subr.bf16.mxu1 %v3198_v45 }
 0x2ae   : > { %v1683_v54 = vsel %vm4174_vm1, %v1678_v57, %v1682_v43  ;;  %v1691_v33 = vor.u32 %v1690_v61, %v1687_v60  ;;  %v1710_v11 = vrot.slane %v1708_v62, 5  ;;  %v2708_v56 = vcombine.low %v1799_v63, %v1799_v63  ;;  %2841 = vmatpush3.bf16.msra.mxu1 %v3198_v45 }
 0x2af   : > { %v2700_v4 = vcombine.low %v1669_v1, %v1683_v54  ;;  %v1705_v6 = vor.u32 %v1704_v9, %v1701_v5  ;;  %v2709_v12 = vcombine.high %v1799_v63, %v1799_v63  ;;  %v2710_v13 = vcombine.low %v1800_v48, %v1800_v48 }
 0x2b0   : > { %v1692_v15 = vrot.slane %v1691_v33, 4  ;;  %v2711_v16 = vcombine.high %v1800_v48, %v1800_v48  ;;  %v2722_v39 = vrot.slane %v2708_v56, 9  ;;  %v2588_v17 = vcombine.low %v919_v10, %v919_v10 }
 0x2b1   : > { %1780 = vrot.lane.b32.xlu0 %v2700_v4, %s3642_s16  ;;  %v1706_v18 = vrot.slane %v1705_v6, 4  ;;  %v1855_v19 = vrot.slane %v2709_v12, 5  ;;  %v2723_v20 = vrot.slane %v2710_v13, 9  ;;  %v2589_v21 = vcombine.high %v919_v10, %v919_v10 }
 0x2b2   : > { %v1697_v22 = vsel %vm4174_vm1, %v1692_v15, %v1696_v2  ;;  %v1859_v23 = vrot.slane %v2711_v16, 5  ;;  %v2590_v24 = vcombine.low %v920_v14, %v920_v14  ;;  %v2591_v25 = vcombine.high %v920_v14, %v920_v14  ;;  %v1457_v15 = vld [vmem:[#allocation5 + $0x28] sm:$0x1e] }
 0x2b3   : > { %v1711_v28 = vsel %vm4174_vm1, %v1706_v18, %v1710_v11  ;;  %v1856_v29 = vsel %vm4160_vm15, %v2722_v39, %v1855_v19  ;;  %v1023_v30 = vshrl.u32 %v2588_v17, 16  ;;  %v1026_v35 = vshll.u32 %v2588_v17, 16  ;;  %v1458_v19 = vld [vmem:[#allocation5 + $0x30] sm:$0x1e] }
 0x2b4   : > { %v2701_v34 = vcombine.low %v1697_v22, %v1711_v28  ;;  %v1860_v36 = vsel %vm4160_vm15, %v2723_v20, %v1859_v23  ;;  %v1032_v37 = vshll.u32 %v2589_v21, 16  ;;  %v1037_v38 = vshrl.u32 %v2590_v24, 16  ;;  %v921_v20 = vld [vmem:[#allocation5 + $0x30] sm:$0x1f] }
 0x2b5   : > { %v2729_v7 = vcombine.low %v1856_v29, %v1860_v36  ;;  %v1025_v41 = vrot.slane %v1023_v30, 4  ;;  %v1028_v42 = vrot.slane %v1026_v35, 5  ;;  %v1040_v43 = vshll.u32 %v2590_v24, 16  ;;  %v922_v36 = vld [vmem:[#allocation5 + $0x38] sm:$0x1f] }
 0x2b6   : > { %1782 = vrot.lane.b32.xlu1 %v2701_v34, %s3642_s16  ;;  %v1034_v46 = vrot.slane %v1032_v37, 5  ;;  %v1039_v47 = vrot.slane %v1037_v38, 4  ;;  %v1046_v49 = vshll.u32 %v2591_v25, 16  ;;  %v2608_v50 = vcombine.low %v1111_v32, %v1111_v32 }
 0x2b7   : > { %1891 = vrot.lane.b32.xlu0 %v2729_v7, %s3639_s17  ;;  %v1029_v51 = vor.u32 %v1028_v42, %v1025_v41  ;;  %v1042_v52 = vrot.slane %v1040_v43, 5  ;;  %v2609_v53 = vcombine.high %v1111_v32, %v1111_v32  ;;  %v2610_v55 = vcombine.low %v1112_v59, %v1112_v59 }
 0x2b8   : > { %v1048_v63 = vrot.slane %v1046_v49, 5  ;;  %v2611_v57 = vcombine.high %v1112_v59, %v1112_v59  ;;  %v2620_v60 = vrot.slane %v2608_v50, 9  ;;  %v2644_v61 = vcombine.low %v1270_v44, %v1270_v44 }
 0x2b9   : > { %v1030_v62 = vrot.slane %v1029_v51, 4  ;;  %v1043_v48 = vor.u32 %v1042_v52, %v1039_v47  ;;  %v1176_v1 = vrot.slane %v2609_v53, 5  ;;  %v2621_v2 = vrot.slane %v2610_v55, 9 }
 0x2ba   : > { %v1180_v5 = vrot.slane %v2611_v57, 5  ;;  %v2645_v9 = vcombine.high %v1270_v44, %v1270_v44  ;;  %v2646_v10 = vcombine.low %v1271_v58, %v1271_v58  ;;  %v2647_v54 = vcombine.high %v1271_v58, %v1271_v58  ;;  %v1268_v58 = vld [vmem:[#allocation5 + $0x28] sm:$0x1f] }
 0x2bb   : > { %v1035_v33 = vsel %vm4174_vm1, %v1030_v62, %v1034_v46  ;;  %v1044_v11 = vrot.slane %v1043_v48, 4  ;;  %v1177_v56 = vsel %vm4160_vm15, %v2620_v60, %v1176_v1  ;;  %v1397_v4 = vshrl.u32 %v2644_v61, 16  ;;  %v1269_v62 = vld [vmem:[#allocation5 + $0x30] sm:$0x1f] }
 0x2bc   : > { %v1181_v6 = vsel %vm4160_vm15, %v2621_v2, %v1180_v5  ;;  %v1400_v12 = vshll.u32 %v2644_v61, 16  ;;  %v1406_v13 = vshll.u32 %v2645_v9, 16  ;;  %v1411_v14 = vshrl.u32 %v2646_v10, 16 }
 0x2bd   : > { %v1049_v16 = vsel %vm4174_vm1, %v1044_v11, %v1048_v63  ;;  %v2626_v39 = vcombine.low %v1177_v56, %v1181_v6  ;;  %v1399_v17 = vrot.slane %v1397_v4, 4  ;;  %v1414_v18 = vshll.u32 %v2646_v10, 16 }
 0x2be   : > { %v2598_v21 = vcombine.low %v1035_v33, %v1049_v16  ;;  %v1402_v22 = vrot.slane %v1400_v12, 5  ;;  %v1408_v23 = vrot.slane %v1406_v13, 5  ;;  %v1413_v24 = vrot.slane %v1411_v14, 4 }
 0x2bf   : > { %1206 = vrot.lane.b32.xlu0 %v2626_v39, %s3636_s25  ;;  %v1416_v25 = vrot.slane %v1414_v18, 5  ;;  %v1420_v28 = vshll.u32 %v2647_v54, 16  ;;  %v2660_v29 = vcombine.low %v1457_v15, %v1457_v15  ;;  %v2661_v30 = vcombine.high %v1457_v15, %v1457_v15  ;;  %s4438_s25 = sadd.s32 %s2762_s10, %s2761_s30  ;;  %s2345_s30 = scalar_lea.sflag [#allocation9], %s4046_s3 }
 0x2c0   : > { %1094 = vrot.lane.b32.xlu1 %v2598_v21, %s4538_s0  ;;  %v1403_v35 = vor.u32 %v1402_v22, %v1399_v17  ;;  %v2662_v32 = vcombine.low %v1458_v19, %v1458_v19  ;;  %v2663_v34 = vcombine.high %v1458_v19, %v1458_v19  ;;  %v2592_v37 = vcombine.low %v921_v20, %v921_v20  ;;  %v1614_v19 = vld [vmem:[#allocation5 + $0x40] sm:$0x1f]  ;;  %s3498_s10 = scalar_lea.vmem %s4450_s21, 1024 }
 0x2c1   : > { %v1417_v38 = vor.u32 %v1416_v25, %v1413_v24  ;;  %v1422_v59 = vrot.slane %v1420_v28, 5  ;;  %v2672_v7 = vrot.slane %v2660_v29, 9  ;;  %v1519_v41 = vrot.slane %v2661_v30, 5  ;;  %v1612_v24 = vld [vmem:[#allocation5 + $0x30] sm:$0x1f]  ;;  %p3499_p8 = scmp.ne.s32.totalorder %s4450_s21, %s3498_s10 }
 0x2c2   : > { %v1404_v42 = vrot.slane %v1403_v35, 4  ;;  %v2673_v43 = vrot.slane %v2662_v32, 9  ;;  %v1523_v44 = vrot.slane %v2663_v34, 5  ;;  %v2593_v45 = vcombine.high %v921_v20, %v921_v20 }
 0x2c3   : > { %v1418_v46 = vrot.slane %v1417_v38, 4  ;;  %v1520_v47 = vsel %vm4160_vm15, %v2672_v7, %v1519_v41  ;;  %v2594_v49 = vcombine.low %v922_v36, %v922_v36  ;;  %v2595_v50 = vcombine.high %v922_v36, %v922_v36  ;;  %p3500_p5 = pnand %p3499_p8, %p4585_p7 }
 0x2c4   : > { %v1409_v51 = vsel %vm4174_vm1, %v1404_v42, %v1408_v23  ;;  %v1524_v52 = vsel %vm4160_vm15, %v2673_v43, %v1523_v44  ;;  %v1051_v53 = vshrl.u32 %v2592_v37, 16  ;;  %v1054_v55 = vshll.u32 %v2592_v37, 16  ;;  %v1613_v37 = vld [vmem:[#allocation5 + $0x38] sm:$0x1f] }
 0x2c5   : > { %v1423_v63 = vsel %vm4174_vm1, %v1418_v46, %v1422_v59  ;;  %v2678_v57 = vcombine.low %v1520_v47, %v1524_v52  ;;  %v1060_v60 = vshll.u32 %v2593_v45, 16  ;;  %v1065_v61 = vshrl.u32 %v2594_v49, 16  ;;  %p3501_p2 = pneg %p3500_p5 }
 0x2c6   : > { %v2651_v48 = vcombine.low %v1409_v51, %v1423_v63  ;;  %v1053_v1 = vrot.slane %v1051_v53, 4  ;;  %v1056_v2 = vrot.slane %v1054_v55, 5  ;;  %v1068_v5 = vshll.u32 %v2594_v49, 16 }
 0x2c7   : > { %1549 = vrot.lane.b32.xlu0 %v2678_v57, %s3638_s2  ;;  %v1062_v9 = vrot.slane %v1060_v60, 5  ;;  %v1067_v10 = vrot.slane %v1065_v61, 4  ;;  %v1074_v54 = vshll.u32 %v2595_v50, 16  ;;  %v2640_v33 = vcombine.low %v1268_v58, %v1268_v58  ;;  %v1803_v61 = vld [vmem:[#allocation5 + $0x40] sm:$0x1e]  ;;  %s2763_s2 = sshll.u32 %s4438_s25, 7 }
 0x2c8   : > { %1442 = vrot.lane.b32.xlu1 %v2651_v48, %s3641_s23  ;;  %v1057_v11 = vor.u32 %v1056_v2, %v1053_v1  ;;  %v1070_v56 = vrot.slane %v1068_v5, 5  ;;  %v2641_v4 = vcombine.high %v1268_v58, %v1268_v58  ;;  %v2642_v6 = vcombine.low %v1269_v62, %v1269_v62  ;;  %v1801_v5 = vld [vmem:[#allocation5 + $0x30] sm:$0x1e]  ;;  %s3644_s25 = smov [#allocation24]  }
 0x2c9   : > { %v1076_v12 = vrot.slane %v1074_v54, 5  ;;  %v2643_v13 = vcombine.high %v1269_v62, %v1269_v62  ;;  %v1369_v14 = vshrl.u32 %v2640_v33, 16  ;;  %v1372_v15 = vshll.u32 %v2640_v33, 16 }
 0x2ca   : > { %v1058_v16 = vrot.slane %v1057_v11, 4  ;;  %v1071_v39 = vor.u32 %v1070_v56, %v1067_v10  ;;  %v1378_v17 = vshll.u32 %v2641_v4, 16  ;;  %v1383_v18 = vshrl.u32 %v2642_v6, 16 }
 0x2cb   : > { %v1371_v20 = vrot.slane %v1369_v14, 4  ;;  %v1374_v21 = vrot.slane %v1372_v15, 5  ;;  %v1386_v22 = vshll.u32 %v2642_v6, 16  ;;  %v1392_v23 = vshll.u32 %v2643_v13, 16 }
 0x2cc   : > { %v1063_v25 = vsel %vm4174_vm1, %v1058_v16, %v1062_v9  ;;  %v1072_v28 = vrot.slane %v1071_v39, 4  ;;  %v1380_v29 = vrot.slane %v1378_v17, 5  ;;  %v1385_v30 = vrot.slane %v1383_v18, 4 }
 0x2cd   : > { %v1375_v35 = vor.u32 %v1374_v21, %v1371_v20  ;;  %v1388_v32 = vrot.slane %v1386_v22, 5  ;;  %v1394_v34 = vrot.slane %v1392_v23, 5  ;;  %v2696_v36 = vcombine.low %v1614_v19, %v1614_v19 }
 0x2ce   : > { %v1077_v38 = vsel %vm4174_vm1, %v1072_v28, %v1076_v12  ;;  %v2697_v59 = vcombine.high %v1614_v19, %v1614_v19  ;;  %v2692_v7 = vcombine.low %v1612_v24, %v1612_v24  ;;  %v2693_v41 = vcombine.high %v1612_v24, %v1612_v24  ;;  %v1802_v12 = vld [vmem:[#allocation5 + $0x38] sm:$0x1e] }
 0x2cf   : > { %v2599_v42 = vcombine.low %v1063_v25, %v1077_v38  ;;  %v1376_v43 = vrot.slane %v1375_v35, 4  ;;  %v1389_v44 = vor.u32 %v1388_v32, %v1385_v30  ;;  %v1741_v45 = vshrl.u32 %v2696_v36, 16 }
 0x2d0   : > { %v1744_v46 = vshll.u32 %v2696_v36, 16  ;;  %v1750_v47 = vshll.u32 %v2697_v59, 16  ;;  %v2694_v49 = vcombine.low %v1613_v37, %v1613_v37  ;;  %v2695_v50 = vcombine.high %v1613_v37, %v1613_v37 }
 0x2d1   : > { %1096 = vrot.lane.b32.xlu1 %v2599_v42, %s4538_s0  ;;  %v1381_v51 = vsel %vm4174_vm1, %v1376_v43, %v1380_v29  ;;  %v1390_v52 = vrot.slane %v1389_v44, 4  ;;  %v1743_v53 = vrot.slane %v1741_v45, 4  ;;  %v1713_v55 = vshrl.u32 %v2692_v7, 16  ;;  %s3502_s0 = sshll.u32 %s3644_s25, 4  ;;  %s3503_s0 = int_to_ptr.vmem [resolvable:$false] %s3502_s0 }
 0x2d2   : > { %v1746_v58 = vrot.slane %v1744_v46, 5  ;;  %v1752_v63 = vrot.slane %v1750_v47, 5  ;;  %v1716_v57 = vshll.u32 %v2692_v7, 16  ;;  %v1722_v60 = vshll.u32 %v2693_v41, 16  ;;  %v4337_v41 = vld [vmem:[#allocation19] sm:$0xff]   ;;  %s3504_s5 = scalar_lea.vmem %s3503_s0, 2048  ;;  %p3505_p9 = scmp.lt.s32.totalorder %s4450_s21, %s3503_s0 }
 0x2d3   : > { %v1395_v62 = vsel %vm4174_vm1, %v1390_v52, %v1394_v34  ;;  %v1715_v48 = vrot.slane %v1713_v55, 4  ;;  %v1727_v1 = vshrl.u32 %v2694_v49, 16  ;;  %v1730_v2 = vshll.u32 %v2694_v49, 16  ;;  %2850 = vmatprep.subr.bf16.mxu0 %v4337_v41  ;;  %2874 = vmatprep.subr.bf16.mxu1 %v4337_v41  ;;  %p3506_p10 = scmp.lt.s32.totalorder %s3504_s5, %s3498_s10 }
 0x2d4   : > { %v2650_v9 = vcombine.low %v1381_v51, %v1395_v62  ;;  %v1747_v10 = vor.u32 %v1746_v58, %v1743_v53  ;;  %v1718_v54 = vrot.slane %v1716_v57, 5  ;;  %v1724_v33 = vrot.slane %v1722_v60, 5  ;;  %2851 = vmatpush3.bf16.msra.mxu0 %v4337_v41 }
 0x2d5   : > { %v1729_v11 = vrot.slane %v1727_v1, 4  ;;  %v1732_v56 = vrot.slane %v1730_v2, 5  ;;  %v1736_v4 = vshll.u32 %v2695_v50, 16  ;;  %v2716_v6 = vcombine.low %v1803_v61, %v1803_v61  ;;  %2852 = vmatprep.subr.bf16.mxu0 %v4339_v40  ;;  %p3507_p1 = por %p3506_p10, %p3505_p9 }
 0x2d6   : > { %1440 = vrot.lane.b32.xlu0 %v2650_v9, %s3641_s23  ;;  %v1748_v13 = vrot.slane %v1747_v10, 4  ;;  %v1719_v14 = vor.u32 %v1718_v54, %v1715_v48  ;;  %v2717_v15 = vcombine.high %v1803_v61, %v1803_v61  ;;  %v2712_v16 = vcombine.low %v1801_v5, %v1801_v5 }
 0x2d7   : > { %v1733_v39 = vor.u32 %v1732_v56, %v1729_v11  ;;  %v1738_v17 = vrot.slane %v1736_v4, 5  ;;  %v2726_v18 = vrot.slane %v2716_v6, 9  ;;  %v2713_v19 = vcombine.high %v1801_v5, %v1801_v5  ;;  %p3508_p11 = pnand %p3507_p1, %p3501_p2 }
 0x2d8   : > { %v1753_v20 = vsel %vm4174_vm1, %v1748_v13, %v1752_v63  ;;  %v1720_v21 = vrot.slane %v1719_v14, 4  ;;  %v1871_v22 = vrot.slane %v2717_v15, 5  ;;  %v2714_v23 = vcombine.low %v1802_v12, %v1802_v12  ;;  %2853 = vmatpush3.bf16.msra.mxu0 %v4339_v40 }
 0x2d9   : > { %v2703_v24 = vcombine.low %v1753_v20, %v4200_v0  ;;  %v1734_v25 = vrot.slane %v1733_v39, 4  ;;  %v2715_v28 = vcombine.high %v1802_v12, %v1802_v12  ;;  %v2724_v29 = vrot.slane %v2712_v16, 9  ;;  %2854 = vmatprep.subr.bf16.mxu0 %v4347_v26  ;;  %v2740_v20 = vld [vmem:[#allocation16] ss:$0 sm:$0xff] }
 0x2da   : > { %v1725_v30 = vsel %vm4174_vm1, %v1720_v21, %v1724_v33  ;;  %v1872_v35 = vsel %vm4160_vm15, %v2726_v18, %v1871_v22  ;;  %v1863_v32 = vrot.slane %v2713_v19, 5  ;;  %v2725_v34 = vrot.slane %v2714_v23, 9  ;;  %v3206_v18 = vld [vmem:[#allocation19 + $0x30] sm:$0xff]   ;;  %v3207_v19 = vld [vmem:[#allocation19 + $0x38] sm:$0xff]  }
 0x2db   : > { %1786 = vrot.lane.b32.xlu1 %v2703_v24, %s3642_s16  ;;  %v1739_v36 = vsel %vm4174_vm1, %v1734_v25, %v1738_v17  ;;  %v1867_v37 = vrot.slane %v2715_v28, 5  ;;  %v2731_v0 = vcombine.low %v1872_v35, %v1876_v3  ;;  %vm1102_vm3 = vcmask 130112   ;;  %v3205_v17 = vld [vmem:[#allocation19 + $0x28] sm:$0xff]   ;;  %v2741_v22 = vld [vmem:[#allocation18] ss:$0 sm:$0xff] }
 0x2dc   : > { %v2702_v38 = vcombine.low %v1725_v30, %v1739_v36  ;;  %v1864_v59 = vsel %vm4160_vm15, %v2724_v29, %v1863_v32  ;;  %2855 = vmatpush3.bf16.msra.mxu0 %v4347_v26  ;;  %vm1214_vm4 = vcmask 195712   ;;  %vm1259_vm5 = vcmask 261312   ;;  %v2071_v25 = vld [vmem:[#allocation3 + $0x10] sm:$0xff]  ;;  %v2069_v35 = vld [vmem:[#allocation3] sm:$0xff] }
 0x2dd   : > { %v1868_v7 = vsel %vm4160_vm15, %v2725_v34, %v1867_v37  ;;  %2856 = vmatprep.subr.bf16.mxu0 %v4351_v27  ;;  %vm1448_vm6 = vcmask 326912   ;;  %vm1792_vm9 = vcmask 523712   ;;  %v2072_v37 = vld [vmem:[#allocation3 + $0x18] sm:$0xff] }
 0x2de   : > { %1784 = vrot.lane.b32.xlu0 %v2702_v38, %s3642_s16  ;;  %v2730_v42 = vcombine.low %v1864_v59, %v1868_v7  ;;  %v2070_v7 = vld [vmem:[#allocation3 + $0x8] sm:$0xff]  ;;  %s4583_s16 = sld [smem:[#allocation42_spill]] }
 0x2df   : > { %1895 = vrot.lane.b32.xlu1 %v2731_v0, %s3639_s17 }
 0x2e0   : > { %2857 = vmatpush3.bf16.msra.mxu0 %v4351_v27 }
 0x2e1   : > { %2858 = vmatprep.subr.bf16.mxu0 %v4355_v31 }
 0x2e2   : > { %1893 = vrot.lane.b32.xlu0 %v2730_v42, %s3639_s17 }
 0x2e4   : > { %2859 = vmatpush3.bf16.msra.mxu0 %v4355_v31  ;;  %s4584_s24 = smov %s4583_s16  ;;  %s4457_s4 = scalar_lea.hbm %s4583_s16, %s2763_s2 }
 0x2e5   : > { %2860 = vmatprep.subr.bf16.mxu0 %v3205_v17 }
 0x2e8   : > { %2861 = vmatpush3.bf16.msra.mxu0 %v3205_v17 }
 0x2e9   : > { %2862 = vmatprep.subr.bf16.mxu0 %v3206_v18 }
 0x2ec   : > { %2863 = vmatpush3.bf16.msra.mxu0 %v3206_v18 }
 0x2ed   : > { %2864 = vmatprep.subr.bf16.mxu0 %v3207_v19 }
 0x2ee   : > { %v1250_v3 = vpop.permute.xlu1 %1249 }
 0x2ef   : > { %v1248_v43 = vpop.permute.xlu0 %1247 }
 0x2f0   : > { %2865 = vmatpush3.bf16.msra.mxu0 %v3207_v19 }
 0x2f3   : > { %v1592_v45 = vpop.permute.xlu0 %1591 }
 0x2f4   : > { %v1203_v44 = vpop.permute.xlu1 %1202 }
 0x2f9   : > { %v1548_v46 = vpop.permute.xlu1 %1547 }
 0x2fc   : > { %v1546_v47 = vpop.permute.xlu0 %1545 }
 0x2ff   : > { %v1205_v49 = vpop.permute.xlu1 %1204 }
 0x301   : > { %v1890_v50 = vpop.permute.xlu0 %1889 }
 0x303   : > { %v1594_v51 = vpop.permute.xlu1 %1593 }
 0x305   : > { %v1252_v52 = vpop.permute.xlu0 %1251 }
 0x307   : > { %v1254_v53 = vpop.permute.xlu1 %1253 }
 0x309   : > { %v4360_v55 = vpop.permute.xlu0 %1595 }
 0x30b   : > { %v1598_v63 = vpop.permute.xlu1 %1597 }
 0x30d   : > { %v1091_v58 = vpop.permute.xlu0 %1090 }
 0x30e   : > { %1103 = vst.msk [vmem:[#allocation6] sm:$0xff] %vm1102_vm3, %v1091_v58 }
 0x30f   : > { %1215 = vst.msk [vmem:[#allocation6] sm:$0xff] %vm1214_vm4, %v1203_v44  ;;  %v1439_v60 = vpop.permute.xlu1 %1438  ;;  %v3643_v44 = vmov 1.0|1.0  }
 0x310   : > { %1260 = vst.msk [vmem:[#allocation6] sm:$0xff] %vm1259_vm5, %v1248_v43 }
 0x312   : > { %v1093_v57 = vpop.permute.xlu0 %1092 }
 0x313   : > { %1104 = vst.msk [vmem:[#allocation6 + $0x8] sm:$0xff] %vm1102_vm3, %v1093_v57  ;;  %v1552_v61 = vpop.permute.xlu1 %1551  ;;  %v2076_v57 = vld [vmem:[#allocation3 + $0x38] sm:$0xff] }
 0x314   : > { %1216 = vst.msk [vmem:[#allocation6 + $0x8] sm:$0xff] %vm1214_vm4, %v1205_v49  ;;  %v2075_v49 = vld [vmem:[#allocation3 + $0x30] sm:$0xff] }
 0x315   : > { %1261 = vst.msk [vmem:[#allocation6 + $0x8] sm:$0xff] %vm1259_vm5, %v1250_v3 }
 0x316   : > { %1450 = vst.msk [vmem:[#allocation6 + $0x8] sm:$0xff] %vm1448_vm6, %v1439_v60 }
 0x317   : > { %1559 = vst.msk [vmem:[#allocation6 + $0x8] sm:$0xff] %vm1557_vm7, %v1548_v46 }
 0x318   : > { %1605 = vst.msk [vmem:[#allocation6 + $0x8] sm:$0xff] %vm1603_vm8, %v1594_v51 }
 0x31a   : > { %v1209_v48 = vpop.permute.xlu1 %1208 }
 0x31c   : > { %v1437_v62 = vpop.permute.xlu0 %1436 }
 0x31d   : > { %1449 = vst.msk [vmem:[#allocation6] sm:$0xff] %vm1448_vm6, %v1437_v62 }
 0x31e   : > { %1558 = vst.msk [vmem:[#allocation6] sm:$0xff] %vm1557_vm7, %v1546_v47 }
 0x31f   : > { %1604 = vst.msk [vmem:[#allocation6] sm:$0xff] %vm1603_vm8, %v1592_v45 }
 0x323   : > { %v1781_v1 = vpop.permute.xlu0 %1780 }
 0x324   : > { %1793 = vst.msk [vmem:[#allocation6] sm:$0xff] %vm1792_vm9, %v1781_v1 }
 0x325   : > { %1902 = vst.msk [vmem:[#allocation6] sm:$0xff] %vm1901_vm10, %v1890_v50 }
 0x328   : > { %v1783_v2 = vpop.permute.xlu1 %1782 }
 0x329   : > { %1794 = vst.msk [vmem:[#allocation6 + $0x8] sm:$0xff] %vm1792_vm9, %v1783_v2  ;;  %v1892_v5 = vpop.permute.xlu0 %1891 }
 0x32a   : > { %1903 = vst.msk [vmem:[#allocation6 + $0x8] sm:$0xff] %vm1901_vm10, %v1892_v5 }
 0x32c   : > { %v1906_v9 = vld [vmem:[#allocation6] sm:$0xff] }
 0x32d   : > { %2842 = vmatprep.mubr.bf16.mxu1 %v1906_v9 }
 0x331   : > { %v1207_v10 = vpop.permute.xlu0 %1206  ;;  %v1907_v54 = vld [vmem:[#allocation6 + $0x8] sm:$0xff] }
 0x332   : > { %v1095_v33 = vpop.permute.xlu1 %1094  ;;  %2843 = vmatmul.mubr.bf16.vlgmr.msra.gmra.mrb[0].mxu1 %v1907_v54 }
 0x333   : > { %1105 = vst.msk [vmem:[#allocation6 + $0x10] sm:$0xff] %vm1102_vm3, %v1095_v33  ;;  %2882 = vmatpush3.bf16.msra.mxu1 %v4337_v41 }
 0x334   : > { %1217 = vst.msk [vmem:[#allocation6 + $0x10] sm:$0xff] %vm1214_vm4, %v1207_v10  ;;  %2875 = vmatprep.subr.bf16.mxu1 %v4339_v40 }
 0x335   : > { %1262 = vst.msk [vmem:[#allocation6 + $0x10] sm:$0xff] %vm1259_vm5, %v1252_v52 }
 0x337   : > { %2883 = vmatpush3.bf16.msra.mxu1 %v4339_v40 }
 0x338   : > { %2876 = vmatprep.subr.bf16.mxu1 %v4347_v26 }
 0x339   : > { %v1550_v56 = vpop.permute.xlu0 %1549 }
 0x33a   : > { %v1443_v11 = vpop.permute.xlu1 %1442 }
 0x33b   : > { %2884 = vmatpush3.bf16.msra.mxu1 %v4347_v26 }
 0x33c   : > { %2877 = vmatprep.subr.bf16.mxu1 %v4351_v27 }
 0x33f   : > { %2885 = vmatpush3.bf16.msra.mxu1 %v4351_v27 }
 0x340   : > { %2878 = vmatprep.subr.bf16.mxu1 %v4355_v31 }
 0x343   : > { %v1097_v4 = vpop.permute.xlu1 %1096  ;;  %2886 = vmatpush3.bf16.msra.mxu1 %v4355_v31 }
 0x344   : > { %1106 = vst.msk [vmem:[#allocation6 + $0x18] sm:$0xff] %vm1102_vm3, %v1097_v4  ;;  %2879 = vmatprep.subr.bf16.mxu1 %v3205_v17 }
 0x345   : > { %1218 = vst.msk [vmem:[#allocation6 + $0x18] sm:$0xff] %vm1214_vm4, %v1209_v48  ;;  %v2074_v48 = vld [vmem:[#allocation3 + $0x28] sm:$0xff] }
 0x346   : > { %1263 = vst.msk [vmem:[#allocation6 + $0x18] sm:$0xff] %vm1259_vm5, %v1254_v53  ;;  %v2073_v53 = vld [vmem:[#allocation3 + $0x20] sm:$0xff] }
 0x347   : > { %1452 = vst.msk [vmem:[#allocation6 + $0x18] sm:$0xff] %vm1448_vm6, %v1443_v11  ;;  %2887 = vmatpush3.bf16.msra.mxu1 %v3205_v17  ;;  %v2280_v17 = vld [vmem:[#allocation4] sm:$0xff] }
 0x348   : > { %v1441_v6 = vpop.permute.xlu0 %1440  ;;  %1561 = vst.msk [vmem:[#allocation6 + $0x18] sm:$0xff] %vm1557_vm7, %v1552_v61  ;;  %2880 = vmatprep.subr.bf16.mxu1 %v3206_v18 }
 0x349   : > { %1451 = vst.msk [vmem:[#allocation6 + $0x10] sm:$0xff] %vm1448_vm6, %v1441_v6  ;;  %v4406_v6 = vld [vmem:[#allocation22] ss:$0 sm:$0xff] }
 0x34a   : > { %1607 = vst.msk [vmem:[#allocation6 + $0x18] sm:$0xff] %vm1603_vm8, %v1598_v63 }
 0x34b   : > { %1560 = vst.msk [vmem:[#allocation6 + $0x10] sm:$0xff] %vm1557_vm7, %v1550_v56  ;;  %2888 = vmatpush3.bf16.msra.mxu1 %v3206_v18  ;;  %v4404_v56 = vld [vmem:[#allocation21] ss:$0 sm:$0xff] }
 0x34c   : > { %1606 = vst.msk [vmem:[#allocation6 + $0x10] sm:$0xff] %vm1603_vm8, %v4360_v55  ;;  %2881 = vmatprep.subr.bf16.mxu1 %v3207_v19 }
 0x34d   : > { %v1787_v12 = vpop.permute.xlu1 %1786 }
 0x34e   : > { %1796 = vst.msk [vmem:[#allocation6 + $0x18] sm:$0xff] %vm1792_vm9, %v1787_v12 }
 0x34f   : > { %2889 = vmatpush3.bf16.msra.mxu1 %v3207_v19 }
 0x350   : > { %v1785_v13 = vpop.permute.xlu0 %1784 }
 0x351   : > { %1795 = vst.msk [vmem:[#allocation6 + $0x10] sm:$0xff] %vm1792_vm9, %v1785_v13  ;;  %v1896_v14 = vpop.permute.xlu1 %1895 }
 0x352   : > { %1905 = vst.msk [vmem:[#allocation6 + $0x18] sm:$0xff] %vm1901_vm10, %v1896_v14  ;;  %v2282_v14 = vld [vmem:[#allocation4 + $0x10] sm:$0xff] }
 0x354   : > { %v1894_v15 = vpop.permute.xlu0 %1893 }
 0x355   : > { %1904 = vst.msk [vmem:[#allocation6 + $0x10] sm:$0xff] %vm1901_vm10, %v1894_v15 }
 0x359   : > { %v1909_v16 = vld [vmem:[#allocation6 + $0x18] sm:$0xff] }
 0x35c   : > { %v1908_v39 = vld [vmem:[#allocation6 + $0x10] sm:$0xff] }
 0x35d   : > { %2846 = vmatprep.mubr.bf16.mxu1 %v1908_v39 }
 0x35e   : > { %2847 = vmatmul.mubr.bf16.gmra.mrb[4].mxu1 %v1909_v16 }
 0x405   : > { %v2844_v21 = vpop.f32.mrb[0].mxu1 }
 0x406   : > { %v2048_v23 = vmul.f32 %v2844_v21, %v2740_v20  ;;  %v2008_v24 = vpop.f32.mrb[1].mxu1  ;;  %v2283_v21 = vld [vmem:[#allocation4 + $0x18] sm:$0xff] }
 0x407   : > { %v2046_v28 = vmul.f32 %v2740_v20, %v2008_v24  ;;  %v2845_v29 = vpop.f32.mrb[2].mxu1 }
 0x408   : > { %v2063_v30 = vadd.f32 %v2741_v22, %v2048_v23  ;;  %v2049_v32 = vmul.f32 %v2845_v29, %v2740_v20  ;;  %v2011_v34 = vpop.f32.mrb[3].mxu1 }
 0x409   : > { %v2061_v36 = vadd.f32 %v2741_v22, %v2046_v28  ;;  %v2047_v38 = vmul.f32 %v2740_v20, %v2011_v34 }
 0x40a   : > { %v2079_v0 = vadd.f32 %v2071_v25, %v2063_v30  ;;  %v2064_v59 = vadd.f32 %v2741_v22, %v2049_v32  ;;  %v2281_v25 = vld [vmem:[#allocation4 + $0x8] sm:$0xff] }
 0x40b   : > { %v2077_v41 = vadd.f32 %v2069_v35, %v2061_v36  ;;  %v2062_v40 = vadd.f32 %v2741_v22, %v2047_v38  ;;  %v3208_v36 = vld [vmem:[%s4050_s28 + $0x10] sm:$0xff] }
 0x40c   : > { %vm2087_vm11 = vcmp.ge.f32.partialorder %v2079_v0, 1.0  ;;  %v2080_v42 = vadd.f32 %v2072_v37, %v2064_v59  ;;  %v3209_v59 = vld [vmem:[%s4050_s28] sm:$0xff] }
 0x40d   : > { %v2103_v26 = vsel %vm2087_vm11, 0.0, %v2079_v0  ;;  %v2078_v27 = vadd.f32 %v2070_v7, %v2062_v40  ;;  %vm2085_vm12 = vcmp.ge.f32.partialorder %v2077_v41, 1.0 }
 0x40e   : > { %2111 = vst [vmem:[#allocation3 + $0x10] sm:$0xff] %v2103_v26  ;;  %vm2088_vm13 = vcmp.ge.f32.partialorder %v2080_v42, 1.0  ;;  %v2101_v31 = vsel %vm2085_vm12, 0.0, %v2077_v41 }
 0x40f   : > { %v2104_v3 = vsel %vm2088_vm13, 0.0, %v2080_v42  ;;  %vm2752_vm14 = vmpackc.low %vm2088_vm13, %vm2087_vm11  ;;  %vm2086_vm15 = vcmp.ge.f32.partialorder %v2078_v27, 1.0  ;;  %2109 = vst [vmem:[#allocation3] sm:$0xff] %v2101_v31  ;;  %v3210_v42 = vld [vmem:[%s4050_s28 + $0x18] sm:$0xff] }
 0x410   : > { %2112 = vst [vmem:[#allocation3 + $0x18] sm:$0xff] %v2104_v3  ;;  %v2102_v43 = vsel %vm2086_vm15, 0.0, %v2078_v27  ;;  %vm2750_vm0 = vmpackc.low %vm2086_vm15, %vm2085_vm12  ;;  %v3211_v3 = vld [vmem:[%s4050_s28 + $0x8] sm:$0xff] }
 0x411   : > { %2110 = vst [vmem:[#allocation3 + $0x8] sm:$0xff] %v2102_v43  ;;  %2866 = vmatprep.mubr.msk.bf16.mxu0 %vm2750_vm0, %v3643_v44 }
 0x412   : > { %2867 = vmatmul.mubr.msk.bf16.vlgmr.msra.gmra.mrb[8].mxu0 %vm2752_vm14, %v3643_v44 }
 0x431   : > { %v2848_v45 = vpop.f32.mrb[4].mxu1 }
 0x432   : > { %v2052_v46 = vmul.f32 %v2848_v45, %v2740_v20  ;;  %v2024_v47 = vpop.f32.mrb[5].mxu1 }
 0x433   : > { %v2050_v50 = vmul.f32 %v2740_v20, %v2024_v47  ;;  %v2849_v51 = vpop.f32.mrb[6].mxu1  ;;  %v2286_v47 = vld [vmem:[#allocation4 + $0x30] sm:$0xff] }
 0x434   : > { %v2067_v52 = vadd.f32 %v2741_v22, %v2052_v46  ;;  %v2053_v55 = vmul.f32 %v2849_v51, %v2740_v20  ;;  %v2027_v58 = vpop.f32.mrb[7].mxu1 }
 0x435   : > { %v2065_v63 = vadd.f32 %v2741_v22, %v2050_v50  ;;  %v2051_v60 = vmul.f32 %v2740_v20, %v2027_v58 }
 0x436   : > { %v2083_v61 = vadd.f32 %v2075_v49, %v2067_v52  ;;  %v2068_v62 = vadd.f32 %v2741_v22, %v2053_v55  ;;  %v2284_v52 = vld [vmem:[#allocation4 + $0x20] sm:$0xff] }
 0x437   : > { %v2081_v1 = vadd.f32 %v2073_v53, %v2065_v63  ;;  %v2066_v2 = vadd.f32 %v2741_v22, %v2051_v60  ;;  %v2287_v63 = vld [vmem:[#allocation4 + $0x38] sm:$0xff] }
 0x438   : > { %vm2091_vm1 = vcmp.ge.f32.partialorder %v2083_v61, 1.0  ;;  %v2084_v5 = vadd.f32 %v2076_v57, %v2068_v62  ;;  %v2285_v62 = vld [vmem:[#allocation4 + $0x28] sm:$0xff] }
 0x439   : > { %v2107_v9 = vsel %vm2091_vm1, 0.0, %v2083_v61  ;;  %v2082_v10 = vadd.f32 %v2074_v48, %v2066_v2  ;;  %vm2089_vm2 = vcmp.ge.f32.partialorder %v2081_v1, 1.0 }
 0x43a   : > { %2115 = vst [vmem:[#allocation3 + $0x30] sm:$0xff] %v2107_v9  ;;  %vm2092_vm3 = vcmp.ge.f32.partialorder %v2084_v5, 1.0  ;;  %v2105_v54 = vsel %vm2089_vm2, 0.0, %v2081_v1 }
 0x43b   : > { %v2108_v33 = vsel %vm2092_vm3, 0.0, %v2084_v5  ;;  %vm2756_vm4 = vmpackc.low %vm2092_vm3, %vm2091_vm1  ;;  %vm2090_vm5 = vcmp.ge.f32.partialorder %v2082_v10, 1.0  ;;  %2113 = vst [vmem:[#allocation3 + $0x20] sm:$0xff] %v2105_v54  ;;  %v3212_v54 = vld [vmem:[%s4050_s28 + $0x30] sm:$0xff] }
 0x43c   : > { %2116 = vst [vmem:[#allocation3 + $0x38] sm:$0xff] %v2108_v33  ;;  %v2106_v11 = vsel %vm2090_vm5, 0.0, %v2082_v10  ;;  %vm2754_vm6 = vmpackc.low %vm2090_vm5, %vm2089_vm2 }
 0x43d   : > { %2114 = vst [vmem:[#allocation3 + $0x28] sm:$0xff] %v2106_v11  ;;  %2870 = vmatprep.mubr.msk.bf16.mxu1 %vm2754_vm6, %v3643_v44 }
 0x43e   : > { %2871 = vmatmul.mubr.msk.bf16.vlgmr.msra.gmra.mrb[8].mxu1 %vm2756_vm4, %v3643_v44 }
 0x4e5   : > { %v2868_v4 = vpop.f32.mrb[8].mxu0 }
 0x4e6   : > { %v2259_v12 = vmul.f32 %v2868_v4, %v4404_v56  ;;  %v2219_v13 = vpop.f32.mrb[9].mxu0  ;;  %v3213_v4 = vld [vmem:[%s4050_s28 + $0x20] sm:$0xff] }
 0x4e7   : > { %v2257_v15 = vmul.f32 %v4404_v56, %v2219_v13  ;;  %v2869_v16 = vpop.f32.mrb[10].mxu0 }
 0x4e8   : > { %v2274_v39 = vadd.f32 %v4406_v6, %v2259_v12  ;;  %v2260_v18 = vmul.f32 %v2869_v16, %v4404_v56  ;;  %v2222_v19 = vpop.f32.mrb[11].mxu0 }
 0x4e9   : > { %v2272_v20 = vadd.f32 %v4406_v6, %v2257_v15  ;;  %v2258_v22 = vmul.f32 %v4404_v56, %v2222_v19 }
 0x4ea   : > { %v2290_v23 = vadd.f32 %v2282_v14, %v2274_v39  ;;  %v2275_v24 = vadd.f32 %v4406_v6, %v2260_v18  ;;  %v3214_v14 = vld [vmem:[%s4050_s28 + $0x38] sm:$0xff] }
 0x4eb   : > { %v2288_v28 = vadd.f32 %v2280_v17, %v2272_v20  ;;  %v2273_v29 = vadd.f32 %v4406_v6, %v2258_v22  ;;  %v3215_v17 = vld [vmem:[%s4050_s28 + $0x28] sm:$0xff] }
 0x4ec   : > { %vm2298_vm7 = vcmp.ge.f32.partialorder %v2290_v23, 1.0  ;;  %v2291_v30 = vadd.f32 %v2283_v21, %v2275_v24 }
 0x4ed   : > { %v2306_v35 = vsel %vm2298_vm7, 1.0, %v3634_v8  ;;  %v2314_v32 = vsel %vm2298_vm7, 0.0, %v2290_v23  ;;  %vm2296_vm8 = vcmp.ge.f32.partialorder %v2288_v28, 1.0  ;;  %v2289_v34 = vadd.f32 %v2281_v25, %v2273_v29 }
 0x4ee   : > { %2322 = vst [vmem:[#allocation4 + $0x10] sm:$0xff] %v2314_v32  ;;  %v2330_v37 = vadd.f32 %v3208_v36, %v2306_v35  ;;  %v2304_v38 = vsel %vm2296_vm8, 1.0, %v3634_v8  ;;  %v2312_v0 = vsel %vm2296_vm8, 0.0, %v2288_v28  ;;  %vm2299_vm9 = vcmp.ge.f32.partialorder %v2291_v30, 1.0 }
 0x4ef   : > { %2320 = vst [vmem:[#allocation4] sm:$0xff] %v2312_v0  ;;  %v2328_v7 = vadd.f32 %v3209_v59, %v2304_v38  ;;  %v2307_v41 = vsel %vm2299_vm9, 1.0, %v3634_v8  ;;  %v2315_v40 = vsel %vm2299_vm9, 0.0, %v2291_v30  ;;  %vm2297_vm10 = vcmp.ge.f32.partialorder %v2289_v34, 1.0 }
 0x4f0   : > { %2338 = vst [vmem:[%s4076_s1 + $0x10] sm:$0xff] %v2330_v37  ;;  %2323 = vst [vmem:[#allocation4 + $0x18] sm:$0xff] %v2315_v40  ;;  %v2331_v26 = vadd.f32 %v3210_v42, %v2307_v41  ;;  %v2305_v27 = vsel %vm2297_vm10, 1.0, %v3634_v8  ;;  %v2313_v31 = vsel %vm2297_vm10, 0.0, %v2289_v34 }
 0x4f1   : > { %2336 = vst [vmem:[%s4076_s1] sm:$0xff] %v2328_v7  ;;  %2321 = vst [vmem:[#allocation4 + $0x8] sm:$0xff] %v2313_v31  ;;  %v2329_v43 = vadd.f32 %v3211_v3, %v2305_v27 }
 0x4f2   : > { %2339 = vst [vmem:[%s4076_s1 + $0x18] sm:$0xff] %v2331_v26 }
 0x4f3   : > { %2337 = vst [vmem:[%s4076_s1 + $0x8] sm:$0xff] %v2329_v43 }
 0x511   : > { %v2872_v44 = vpop.f32.mrb[8].mxu1 }
 0x512   : > { %v2263_v45 = vmul.f32 %v2872_v44, %v4404_v56  ;;  %v2235_v46 = vpop.f32.mrb[9].mxu1 }
 0x513   : > { %v2261_v49 = vmul.f32 %v4404_v56, %v2235_v46  ;;  %v2873_v50 = vpop.f32.mrb[10].mxu1 }
 0x514   : > { %v2278_v51 = vadd.f32 %v4406_v6, %v2263_v45  ;;  %v2264_v53 = vmul.f32 %v2873_v50, %v4404_v56  ;;  %v2238_v55 = vpop.f32.mrb[11].mxu1 }
 0x515   : > { %v2276_v58 = vadd.f32 %v4406_v6, %v2261_v49  ;;  %v2262_v57 = vmul.f32 %v4404_v56, %v2238_v55 }
 0x516   : > { %v2294_v60 = vadd.f32 %v2286_v47, %v2278_v51  ;;  %v2279_v61 = vadd.f32 %v4406_v6, %v2264_v53 }
 0x517   : > { %v2292_v48 = vadd.f32 %v2284_v52, %v2276_v58  ;;  %v2277_v1 = vadd.f32 %v4406_v6, %v2262_v57 }
 0x518   : > { %vm2302_vm11 = vcmp.ge.f32.partialorder %v2294_v60, 1.0  ;;  %v2295_v2 = vadd.f32 %v2287_v63, %v2279_v61 }
 0x519   : > { %v2310_v5 = vsel %vm2302_vm11, 1.0, %v3634_v8  ;;  %v2318_v9 = vsel %vm2302_vm11, 0.0, %v2294_v60  ;;  %vm2300_vm12 = vcmp.ge.f32.partialorder %v2292_v48, 1.0  ;;  %v2293_v10 = vadd.f32 %v2285_v62, %v2277_v1 }
 0x51a   : > { %2326 = vst [vmem:[#allocation4 + $0x30] sm:$0xff] %v2318_v9  ;;  %v2334_v33 = vadd.f32 %v3212_v54, %v2310_v5  ;;  %v2308_v11 = vsel %vm2300_vm12, 1.0, %v3634_v8  ;;  %v2316_v56 = vsel %vm2300_vm12, 0.0, %v2292_v48  ;;  %vm2303_vm13 = vcmp.ge.f32.partialorder %v2295_v2, 1.0 }
 0x51b   : > { %2324 = vst [vmem:[#allocation4 + $0x20] sm:$0xff] %v2316_v56  ;;  %v2332_v6 = vadd.f32 %v3213_v4, %v2308_v11  ;;  %v2311_v12 = vsel %vm2303_vm13, 1.0, %v3634_v8  ;;  %v2319_v13 = vsel %vm2303_vm13, 0.0, %v2295_v2  ;;  %vm2301_vm14 = vcmp.ge.f32.partialorder %v2293_v10, 1.0 }
 0x51c   : > { %2342 = vst [vmem:[%s4076_s1 + $0x30] sm:$0xff] %v2334_v33  ;;  %2327 = vst [vmem:[#allocation4 + $0x38] sm:$0xff] %v2319_v13  ;;  %v2335_v15 = vadd.f32 %v3214_v14, %v2311_v12  ;;  %v2309_v16 = vsel %vm2301_vm14, 1.0, %v3634_v8  ;;  %v2317_v39 = vsel %vm2301_vm14, 0.0, %v2293_v10 }
 0x51d   : > { %2340 = vst [vmem:[%s4076_s1 + $0x20] sm:$0xff] %v2332_v6  ;;  %2325 = vst [vmem:[#allocation4 + $0x28] sm:$0xff] %v2317_v39  ;;  %v2333_v18 = vadd.f32 %v3215_v17, %v2309_v16 }
 0x51e   : > { %2343 = vst [vmem:[%s4076_s1 + $0x38] sm:$0xff] %v2335_v15 }
 0x51f   : > { %2341 = vst [vmem:[%s4076_s1 + $0x28] sm:$0xff] %v2333_v18 }
 0x520   : > { %3511 = shalt.err (!%p3508_p11)
}
 0x521   : > { %s3512_s28 = scalar_lea.hbm %s4457_s4, 1024  ;;  %s3516_s17 = scalar_lea.hbm %s4584_s24, 8192 }
 0x522   : > { %p3513_p12 = scmp.ne.s32.totalorder %s4457_s4, %s3512_s28  ;;  %p3517_p3 = scmp.lt.u32.totalorder %s4457_s4, %s4584_s24 }
 0x523   : > { %p3518_p6 = scmp.lt.u32.totalorder %s3516_s17, %s3512_s28  ;;  %p3520_p8 = scmp.lt.u32.totalorder %s3512_s28, %s4457_s4 }
 0x524   : > { %p3514_p13 = pnand %p3513_p12, %p4585_p7 }
 0x525   : > { %p3519_p4 = por %p3518_p6, %p3517_p3 }
 0x526   : > { %p3515_p0 = pneg %p3514_p13 }
 0x527   : > { %p3521_p5 = por %p3520_p8, %p3519_p4 }
 0x529   : > { %p3522_p2 = pnand %p3521_p5, %p3515_p0 }
 0x52b   : > { %3525 = shalt.err (!%p3522_p2)
}
 0x52c   : > { %s3645_s5 = smov 128   ;;  %s4586_s16 = smov 8  }
 0x52d   : > { %2928 = dma.vmem_to_hbm [thread:$0]  (%p4585_p7), %s4450_s21, 1024, %s4457_s4, %s2345_s30, %s3645_s5, %s3645_s5, %s4586_s16  }
 0x52e PF: > { %p2985_p9 = scmp.ge.s32.totalorder %s3616_s20, 2  ;;  %s2375_s10 = sand.u32 1, %s3588_s13  }
 0x52f   : > { %p4587_p10 = scmp.ne.s32.totalorder %s4567_s27, 0  ;;  %s2376_s25 = scalar_lea.sflag [#allocation9], %s2375_s10 }
 0x531   : > { %p2963_p1 = pnand %p2985_p9, %p4587_p10 }
 0x533   : > { %3583 = dma.done.wait (!%p2963_p1), %s2376_s25, 1024  }
 0x534   : > { %3585 = vsyncadd (!%p2963_p1), %s2376_s25, 4294966272  ;;  %s31_s20 = sadd.s32 1, %s3616_s20   ;;  %s4588_s13 = smov %s3592_s14 }
 0x535   : > { %p28_p11 = scmp.ge.s32.totalorder %s31_s20, 10   ;;  %s4589_s14 = smov %s3596_s15 }
 0x536   : > { %s4590_s15 = smov %s3998_s29  ;;  %s4591_s16 = smov %s3608_s18 }
 0x537   : > { %s4592_s17 = smov %s3612_s19  ;;  %s4593_s18 = smov %s4596_s11 }
 0x538   : > { %s4594_s19 = smov %s4600_s26  ;;  %30 = sbr.rel (!%p28_p11) target bundleno = 20 (0x14), region = 147 }
 0x53f   :  { %2381 = vsyncpa [#allocation8], 1 }
 0x540   :  { %2383 = vsyncpa [#allocation8 + $0x1], 1 }
 0x541   :  { %2384 = vsyncpa [#allocation11], 1 }
 0x542   :  { %2385 = vsyncpa [#allocation14], 1 }
 0x543   :  { %2386 = vsyncpa [#allocation17], 1 }
 0x544   :  { %2387 = vsyncpa [#allocation20], 1 }
 0x545   :  { %2388 = vsyncpa [#allocation23], 1 }
 0x546   :  { %2389 = vsyncpa [#allocation9], 1 }
 0x547   :  { %2391 = vsyncpa [#allocation9 + $0x1], 1 }

</bundles_post_ra>
